<compile_context>
chip_gen: v6e
topology: v6e:2x2x1
jax: 0.10.0
libtpu: 0.0.40
codegen_flags: <defaults>
</compile_context>

<pallas_src>
import functools
import math

import jax
import jax.numpy as jnp
from jax.experimental import pallas as pl
from jax.experimental.pallas import tpu as pltpu


_MAX_ROW_TILE = 512  # rows per grid step for large graphs (multiple of 8)


def _row_tile(n):
    return n if n <= _MAX_ROW_TILE else _MAX_ROW_TILE


# ---------------------------------------------------------------------------
# Kernel 1: EdgeBlock GRU (fused sender gather + split-weight GRUCell)
# ---------------------------------------------------------------------------
def _edge_gru_kernel(s_ref, e_ref, nodes_ref, he_ref, g_ref,
                     wxe_ref, wxv_ref, wxg_ref, wh_ref, bi_ref, bh_ref,
                     out_ref):
    n_nodes = nodes_ref.shape[0]
    te = s_ref.shape[0]

    # Sender-node gather: one-hot mask built in VMEM from indices (no HBM
    # one-hot tensor), contracted on the MXU in bf16.
    s = s_ref[...]                                                  # (te, 1) i32
    iota_n = jax.lax.broadcasted_iota(jnp.int32, (te, n_nodes), 1)
    sender_oh = jnp.where(iota_n == s, 1.0, 0.0).astype(jnp.bfloat16)
    nodes_bf = nodes_ref[...].astype(jnp.bfloat16)
    src = jnp.dot(sender_oh, nodes_bf,
                  preferred_element_type=jnp.float32)               # (te, Dv)

    x_e = e_ref[...].astype(jnp.bfloat16)
    x_v = src.astype(jnp.bfloat16)
    g_v = g_ref[...].astype(jnp.bfloat16)                           # (1, Dg)
    h = he_ref[...]                                                 # (te, H) f32
    h_bf = h.astype(jnp.bfloat16)

    # Split-weight input projection: no concat, no (te,3H) lane slicing.
    def gi(k):
        return (jnp.dot(x_e, wxe_ref[k], preferred_element_type=jnp.float32)
                + jnp.dot(x_v, wxv_ref[k], preferred_element_type=jnp.float32)
                + jnp.dot(g_v, wxg_ref[k], preferred_element_type=jnp.float32)
                + bi_ref[k])

    def gh(k):
        return jnp.dot(h_bf, wh_ref[k],
                       preferred_element_type=jnp.float32) + bh_ref[k]

    r = jax.nn.sigmoid(gi(0) + gh(0))
    z = jax.nn.sigmoid(gi(1) + gh(1))
    n = jnp.tanh(gi(2) + r * gh(2))       # r * (W_hn h + b_hn)  (PyTorch GRUCell)
    out_ref[...] = (1.0 - z) * n + z * h


def edge_block_call(senders_col, edge_in, node_full, h_e, g, p):
    E, H = h_e.shape
    N, Dv = node_full.shape
    De = edge_in.shape[1]
    Dg = g.shape[1]
    te = _row_tile(E)
    wxe, wxv, wxg, wh, bi, bh = p
    return pl.pallas_call(
        _edge_gru_kernel,
        grid=(pl.cdiv(E, te),),
        in_specs=[
            pl.BlockSpec((te, 1), lambda i: (i, 0)),          # senders (col)
            pl.BlockSpec((te, De), lambda i: (i, 0)),         # edge features
            pl.BlockSpec((N, Dv), lambda i: (0, 0)),          # all node feats (resident)
            pl.BlockSpec((te, H), lambda i: (i, 0)),          # h_e
            pl.BlockSpec((1, Dg), lambda i: (0, 0)),          # global attr
            pl.BlockSpec(wxe.shape, lambda i: (0, 0, 0)),
            pl.BlockSpec(wxv.shape, lambda i: (0, 0, 0)),
            pl.BlockSpec(wxg.shape, lambda i: (0, 0, 0)),
            pl.BlockSpec(wh.shape, lambda i: (0, 0, 0)),
            pl.BlockSpec(bi.shape, lambda i: (0, 0, 0)),
            pl.BlockSpec(bh.shape, lambda i: (0, 0, 0)),
        ],
        out_specs=pl.BlockSpec((te, H), lambda i: (i, 0)),
        out_shape=jax.ShapeDtypeStruct((E, H), jnp.float32),
        input_output_aliases={3: 0},                          # update h_e in place
        compiler_params=pltpu.CompilerParams(
            dimension_semantics=("parallel",)),
    )(senders_col, edge_in, node_full, h_e, g, wxe, wxv, wxg, wh, bi, bh)


# ---------------------------------------------------------------------------
# Kernel 2: NodeBlock GRU (fused receiver aggregation) + GlobalBlock
# ---------------------------------------------------------------------------
def _node_global_kernel(recv_ref, he_ref, x_ref, hv_ref, g_ref,
                        wxa_ref, wxv_ref, wxg_ref, wh_ref, bi_ref, bh_ref,
                        wge_ref, wgv_ref, wgg_ref, bg_ref,
                        hv_out_ref, g_out_ref, sum_v_ref, *, n_nodes):
    i = pl.program_id(0)
    tn = hv_ref.shape[0]
    n_edges = he_ref.shape[0]

    @pl.when(i == 0)
    def _():
        sum_v_ref[...] = jnp.zeros_like(sum_v_ref)

    # Received-edge sum aggregation: receiver one-hot built in VMEM.
    # TODO(synk): received-edges reducer assumed 'sum' (graph_nets default);
    # NodeBlock source was not provided.
    he = he_ref[...]                                                # (E, H) f32, resident
    he_bf = he.astype(jnp.bfloat16)
    recv = recv_ref[...]                                            # (1, E) i32
    row_ids = i * tn + jax.lax.broadcasted_iota(jnp.int32, (tn, n_edges), 0)
    recv_oh = jnp.where(row_ids == recv, 1.0, 0.0).astype(jnp.bfloat16)
    agg = jnp.dot(recv_oh, he_bf, preferred_element_type=jnp.float32)

    x_v = x_ref[...].astype(jnp.bfloat16)
    g_v = g_ref[...].astype(jnp.bfloat16)
    h = hv_ref[...]
    h_bf = h.astype(jnp.bfloat16)
    agg_bf = agg.astype(jnp.bfloat16)

    def gi(k):
        return (jnp.dot(agg_bf, wxa_ref[k], preferred_element_type=jnp.float32)
                + jnp.dot(x_v, wxv_ref[k], preferred_element_type=jnp.float32)
                + jnp.dot(g_v, wxg_ref[k], preferred_element_type=jnp.float32)
                + bi_ref[k])

    def gh(k):
        return jnp.dot(h_bf, wh_ref[k],
                       preferred_element_type=jnp.float32) + bh_ref[k]

    r = jax.nn.sigmoid(gi(0) + gh(0))
    z = jax.nn.sigmoid(gi(1) + gh(1))
    n = jnp.tanh(gi(2) + r * gh(2))
    new_hv = (1.0 - z) * n + z * h
    hv_out_ref[...] = new_hv

    # Node-mean accumulator for the GlobalBlock (mask ragged padding rows).
    valid = (i * tn + jax.lax.broadcasted_iota(jnp.int32, (tn, 1), 0)) < n_nodes
    sum_v_ref[...] += jnp.sum(jnp.where(valid, new_hv, 0.0),
                              axis=0, keepdims=True)

    # GlobalBlock: [mean edges, mean nodes, global] -> Linear -> ReLU.
    @pl.when(i == pl.num_programs(0) - 1)
    def _():
        mean_e = (jnp.sum(he, axis=0, keepdims=True)
                  * (1.0 / n_edges)).astype(jnp.bfloat16)
        mean_v = (sum_v_ref[...] * (1.0 / n_nodes)).astype(jnp.bfloat16)
        out = (jnp.dot(mean_e, wge_ref[...], preferred_element_type=jnp.float32)
               + jnp.dot(mean_v, wgv_ref[...], preferred_element_type=jnp.float32)
               + jnp.dot(g_v, wgg_ref[...], preferred_element_type=jnp.float32)
               + bg_ref[...])
        g_out_ref[...] = jnp.maximum(out, 0.0)


def node_global_call(recv_row, he, node_in, h_v, g, nb_p, gb_p):
    N, H = h_v.shape
    E = he.shape[0]
    Dv = node_in.shape[1]
    Dg = g.shape[1]
    tn = _row_tile(N)
    wxa, wxv, wxg, wh, bi, bh = nb_p
    wge, wgv, wgg, bg = gb_p
    kern = functools.partial(_node_global_kernel, n_nodes=N)
    return pl.pallas_call(
        kern,
        grid=(pl.cdiv(N, tn),),
        in_specs=[
            pl.BlockSpec((1, E), lambda i: (0, 0)),            # receivers (row)
            pl.BlockSpec((E, H), lambda i: (0, 0)),            # new_he (resident)
            pl.BlockSpec((tn, Dv), lambda i: (i, 0)),          # node features
            pl.BlockSpec((tn, H), lambda i: (i, 0)),           # h_v
            pl.BlockSpec((1, Dg), lambda i: (0, 0)),           # global attr
            pl.BlockSpec(wxa.shape, lambda i: (0, 0, 0)),
            pl.BlockSpec(wxv.shape, lambda i: (0, 0, 0)),
            pl.BlockSpec(wxg.shape, lambda i: (0, 0, 0)),
            pl.BlockSpec(wh.shape, lambda i: (0, 0, 0)),
            pl.BlockSpec(bi.shape, lambda i: (0, 0, 0)),
            pl.BlockSpec(bh.shape, lambda i: (0, 0, 0)),
            pl.BlockSpec(wge.shape, lambda i: (0, 0)),
            pl.BlockSpec(wgv.shape, lambda i: (0, 0)),
            pl.BlockSpec(wgg.shape, lambda i: (0, 0)),
            pl.BlockSpec(bg.shape, lambda i: (0, 0)),
        ],
        out_specs=(
            pl.BlockSpec((tn, H), lambda i: (i, 0)),
            pl.BlockSpec((1, Dg), lambda i: (0, 0)),
        ),
        out_shape=(
            jax.ShapeDtypeStruct((N, H), jnp.float32),
            jax.ShapeDtypeStruct((1, Dg), jnp.float32),
        ),
        scratch_shapes=[pltpu.VMEM((1, H), jnp.float32)],
        input_output_aliases={3: 0},                           # update h_v in place
        compiler_params=pltpu.CompilerParams(
            dimension_semantics=("arbitrary",)),               # cross-tile accumulation
    )(recv_row, he, node_in, h_v, g,
      wxa, wxv, wxg, wh, bi, bh, wge, wgv, wgg, bg)


# ---------------------------------------------------------------------------
# Parameter init (torch-style uniform) + one-time prepare (split/transpose/bf16)
# ---------------------------------------------------------------------------
def _uniform(key, shape, k):
    return jax.random.uniform(key, shape, jnp.float32, -k, k)


def init_gru_params(key, input_size, hidden_size):
    k = 1.0 / math.sqrt(hidden_size)
    ks = jax.random.split(key, 4)
    return (_uniform(ks[0], (3 * hidden_size, input_size), k),
            _uniform(ks[1], (3 * hidden_size, hidden_size), k),
            _uniform(ks[2], (3 * hidden_size,), k),
            _uniform(ks[3], (3 * hidden_size,), k))


def init_linear_params(key, in_dim, out_dim):
    k = 1.0 / math.sqrt(in_dim)
    ks = jax.random.split(key, 2)
    return (_uniform(ks[0], (out_dim, in_dim), k),
            _uniform(ks[1], (out_dim,), k))


def init_rgn_params(key, input_edge_dim, input_node_dim, rgn_global_dim,
                    rgn_hidden_dim, num_spatial_hops):
    params = []
    keys = jax.random.split(key, num_spatial_hops)
    for l in range(num_spatial_hops):
        k_eb, k_nb, k_gb = jax.random.split(keys[l], 3)
        if l == 0:
            eb_in = input_edge_dim + input_node_dim + rgn_global_dim
            nb_in = rgn_hidden_dim + input_node_dim + rgn_global_dim
        else:
            eb_in = rgn_hidden_dim + rgn_hidden_dim + rgn_global_dim
            nb_in = rgn_hidden_dim + rgn_hidden_dim + rgn_global_dim
        gb_in = rgn_hidden_dim + rgn_hidden_dim + rgn_global_dim
        params.append({
            'eb': init_gru_params(k_eb, eb_in, rgn_hidden_dim),
            'nb': init_gru_params(k_nb, nb_in, rgn_hidden_dim),
            'gb': init_linear_params(k_gb, gb_in, rgn_global_dim),
        })
    return params


def prepare_gru_params(gru, seg_sizes):
    """Split torch (3H, Din)/(3H, H) GRU weights per gate + per input segment,
    transpose to (Din_seg, H), cast matmul weights to bf16 — done once."""
    w_ih, w_hh, b_ih, b_hh = gru
    H = w_hh.shape[1]
    w_ih_t = jnp.transpose(w_ih.reshape(3, H, -1), (0, 2, 1))   # (3, Din, H)
    w_hh_t = jnp.transpose(w_hh.reshape(3, H, H), (0, 2, 1))    # (3, H, H)
    segs, off = [], 0
    for s in seg_sizes:
        segs.append(w_ih_t[:, off:off + s, :].astype(jnp.bfloat16))
        off += s
    return (*segs,
            w_hh_t.astype(jnp.bfloat16),
            b_ih.reshape(3, 1, H).astype(jnp.float32),
            b_hh.reshape(3, 1, H).astype(jnp.float32))


def prepare_global_params(lin, H, Dg):
    w, b = lin                                                   # (Dg, 2H+Dg), (Dg,)
    return (w[:, :H].T.astype(jnp.bfloat16),
            w[:, H:2 * H].T.astype(jnp.bfloat16),
            w[:, 2 * H:].T.astype(jnp.bfloat16),
            b.reshape(1, Dg).astype(jnp.float32))


def prepare_rgn_params(raw_params, input_edge_dim, input_node_dim,
                       rgn_global_dim, rgn_hidden_dim, num_spatial_hops):
    H, Dg = rgn_hidden_dim, rgn_global_dim
    prepared = []
    for l, p in enumerate(raw_params):
        if l == 0:
            eb_segs = (input_edge_dim, input_node_dim, Dg)
            nb_segs = (H, input_node_dim, Dg)
        else:
            eb_segs = (H, H, Dg)
            nb_segs = (H, H, Dg)
        prepared.append({
            'eb': prepare_gru_params(p['eb'], eb_segs),
            'nb': prepare_gru_params(p['nb'], nb_segs),
            'gb': prepare_global_params(p['gb'], H, Dg),
        })
    return prepared


# ---------------------------------------------------------------------------
# RGN forward: 2 fused pallas_calls per hop, no glue concat/broadcast/transpose
# ---------------------------------------------------------------------------
def rgn_forward(params, x, e, senders, receivers, global_attr,
                rgn_hidden_dim, num_spatial_hops):
    N, E, H = x.shape[0], e.shape[0], rgn_hidden_dim
    senders_col = senders.astype(jnp.int32).reshape(E, 1)
    recv_row = receivers.astype(jnp.int32).reshape(1, E)
    g = global_attr.astype(jnp.float32)

    edata = {'e': e.astype(jnp.float32)}
    ndata = {'x': x.astype(jnp.float32)}

    for l in range(num_spatial_hops):
        he_key, hv_key = f'h{l}_e', f'h{l}_v'
        if he_key not in edata:
            edata[he_key] = jnp.zeros((E, H), jnp.float32)
        if hv_key not in ndata:
            ndata[hv_key] = jnp.zeros((N, H), jnp.float32)

        edge_in = edata['e'] if l == 0 else edata[f'h{l-1}_e']
        node_in = ndata['x'] if l == 0 else ndata[f'h{l-1}_v']
        p = params[l]

        # EdgeBlock: [edge, sender node, global] -> GRUCell(-, h_e)
        new_he = edge_block_call(senders_col, edge_in, node_in,
                                 edata[he_key], g, p['eb'])
        edata[he_key] = new_he

        # NodeBlock + GlobalBlock fused
        new_hv, g = node_global_call(recv_row, new_he, node_in,
                                     ndata[hv_key], g, p['nb'], p['gb'])
        ndata[hv_key] = new_hv

    return edata, ndata, g


# ---------------------------------------------------------------------------
# Main
# ---------------------------------------------------------------------------
if __name__ == "__main__":
    input_edge_dim = 6
    input_node_dim = 4
    rgn_global_dim = 8
    rgn_hidden_dim = 32
    num_spatial_hops = 1
    N, E = 8, 16

    key = jax.random.PRNGKey(0)
    k_x, k_e, k_s, k_r, k_g, k_p = jax.random.split(key, 6)
    x = jax.random.normal(k_x, (N, input_node_dim), jnp.float32)
    e = jax.random.normal(k_e, (E, input_edge_dim), jnp.float32)
    senders = jax.random.randint(k_s, (E,), 0, N, dtype=jnp.int32)
    receivers = jax.random.randint(k_r, (E,), 0, N, dtype=jnp.int32)
    global_attr = jax.random.normal(k_g, (1, rgn_global_dim), jnp.float32)

    raw_params = init_rgn_params(k_p, input_edge_dim, input_node_dim,
                                 rgn_global_dim, rgn_hidden_dim,
                                 num_spatial_hops)
    params = prepare_rgn_params(raw_params, input_edge_dim, input_node_dim,
                                rgn_global_dim, rgn_hidden_dim,
                                num_spatial_hops)

    fwd = jax.jit(functools.partial(rgn_forward,
                                    rgn_hidden_dim=rgn_hidden_dim,
                                    num_spatial_hops=num_spatial_hops))
    edata, ndata, g_out = fwd(params, x, e, senders, receivers, global_attr)
    jax.block_until_ready((edata, ndata, g_out))

    assert edata['h0_e'].shape == (E, rgn_hidden_dim)
    assert ndata['h0_v'].shape == (N, rgn_hidden_dim)
    assert g_out.shape == (1, rgn_global_dim)
    assert bool(jnp.all(jnp.isfinite(edata['h0_e'])))
    assert bool(jnp.all(jnp.isfinite(ndata['h0_v'])))
    assert bool(jnp.all(jnp.isfinite(g_out)))
    print("KERNEL_OK")
</pallas_src>

<mosaic_0001>
module attributes {stable_mosaic.version = 11 : i64} {
  func.func @_node_global_kernel(%arg0: i32, %arg1: memref<1x16xi32, #tpu.memory_space<vmem>>, %arg2: memref<16x32xf32, #tpu.memory_space<vmem>>, %arg3: memref<8x4xf32, #tpu.memory_space<vmem>>, %arg4: memref<8x32xf32, #tpu.memory_space<vmem>>, %arg5: memref<1x8xf32, #tpu.memory_space<vmem>>, %arg6: memref<3x32x32xbf16, #tpu.memory_space<vmem>>, %arg7: memref<3x4x32xbf16, #tpu.memory_space<vmem>>, %arg8: memref<3x8x32xbf16, #tpu.memory_space<vmem>>, %arg9: memref<3x32x32xbf16, #tpu.memory_space<vmem>>, %arg10: memref<3x1x32xf32, #tpu.memory_space<vmem>>, %arg11: memref<3x1x32xf32, #tpu.memory_space<vmem>>, %arg12: memref<32x8xbf16, #tpu.memory_space<vmem>>, %arg13: memref<32x8xbf16, #tpu.memory_space<vmem>>, %arg14: memref<8x8xbf16, #tpu.memory_space<vmem>>, %arg15: memref<1x8xf32, #tpu.memory_space<vmem>>, %arg16: memref<8x32xf32, #tpu.memory_space<vmem>>, %arg17: memref<1x8xf32, #tpu.memory_space<vmem>>, %arg18: memref<1x32xf32, #tpu.memory_space<vmem>>) attributes {dimension_semantics = [#tpu.dimension_semantics<arbitrary>], iteration_bounds = array<i64: 1>, scalar_prefetch = 0 : i64, scratch_operands = 1 : i64, tpu.core_type = #tpu.core_type<tc>, window_params = [{pipeline_mode = #tpu.pipeline_mode<synchronous>, transform_indices = @transform_0, window_bounds = array<i64: 1, 16>}, {pipeline_mode = #tpu.pipeline_mode<synchronous>, transform_indices = @transform_1, window_bounds = array<i64: 16, 32>}, {transform_indices = @transform_2, window_bounds = array<i64: 8, 4>}, {transform_indices = @transform_3, window_bounds = array<i64: 8, 32>}, {pipeline_mode = #tpu.pipeline_mode<synchronous>, transform_indices = @transform_4, window_bounds = array<i64: 1, 8>}, {pipeline_mode = #tpu.pipeline_mode<synchronous>, transform_indices = @transform_5, window_bounds = array<i64: 3, 32, 32>}, {pipeline_mode = #tpu.pipeline_mode<synchronous>, transform_indices = @transform_6, window_bounds = array<i64: 3, 4, 32>}, {pipeline_mode = #tpu.pipeline_mode<synchronous>, transform_indices = @transform_7, window_bounds = array<i64: 3, 8, 32>}, {pipeline_mode = #tpu.pipeline_mode<synchronous>, transform_indices = @transform_8, window_bounds = array<i64: 3, 32, 32>}, {pipeline_mode = #tpu.pipeline_mode<synchronous>, transform_indices = @transform_9, window_bounds = array<i64: 3, 1, 32>}, {pipeline_mode = #tpu.pipeline_mode<synchronous>, transform_indices = @transform_10, window_bounds = array<i64: 3, 1, 32>}, {pipeline_mode = #tpu.pipeline_mode<synchronous>, transform_indices = @transform_11, window_bounds = array<i64: 32, 8>}, {pipeline_mode = #tpu.pipeline_mode<synchronous>, transform_indices = @transform_12, window_bounds = array<i64: 32, 8>}, {pipeline_mode = #tpu.pipeline_mode<synchronous>, transform_indices = @transform_13, window_bounds = array<i64: 8, 8>}, {pipeline_mode = #tpu.pipeline_mode<synchronous>, transform_indices = @transform_14, window_bounds = array<i64: 1, 8>}, {transform_indices = @transform_15, window_bounds = array<i64: 8, 32>}, {pipeline_mode = #tpu.pipeline_mode<synchronous>, transform_indices = @transform_16, window_bounds = array<i64: 1, 8>}]} {
    %c0_i32 = arith.constant 0 : i32
    %0 = arith.cmpi eq, %arg0, %c0_i32 : i32
    %1 = arith.extui %0 : i1 to i32
    %c0_i32_0 = arith.constant 0 : i32
    %2 = arith.cmpi ne, %1, %c0_i32_0 : i32
    scf.if %2 {
      %cst_91 = arith.constant 0.000000e+00 : f32
      %132 = vector.broadcast %cst_91 : f32 to vector<1x32xf32>
      %c0_92 = arith.constant 0 : index
      %c0_93 = arith.constant 0 : index
      %133 = vector.load %arg18[%c0_92, %c0_93] : memref<1x32xf32, #tpu.memory_space<vmem>>, vector<1x32xf32>
      tpu.vector_store %arg18[%c0_92, %c0_93], %132 {strides = array<i32>} : memref<1x32xf32, #tpu.memory_space<vmem>>, vector<1x32xf32>,
    } else {
    }
    %c0 = arith.constant 0 : index
    %c0_1 = arith.constant 0 : index
    %3 = vector.load %arg2[%c0, %c0_1] : memref<16x32xf32, #tpu.memory_space<vmem>>, vector<16x32xf32>
    %4 = arith.truncf %3 : vector<16x32xf32> to vector<16x32xbf16>
    %c0_2 = arith.constant 0 : index
    %c0_3 = arith.constant 0 : index
    %5 = vector.load %arg1[%c0_2, %c0_3] : memref<1x16xi32, #tpu.memory_space<vmem>>, vector<1x16xi32>
    %c8_i32 = arith.constant 8 : i32
    %6 = arith.muli %arg0, %c8_i32 : i32
    %7 = tpu.iota {dimensions = array<i32: 0>} : vector<8x16xi32>
    %8 = vector.broadcast %6 : i32 to vector<8x16xi32>
    %9 = arith.addi %8, %7 : vector<8x16xi32>
    %10 = vector.broadcast %5 : vector<1x16xi32> to vector<8x16xi32>
    %11 = arith.cmpi eq, %9, %10 : vector<8x16xi32>
    %cst = arith.constant 1.000000e+00 : f32
    %cst_4 = arith.constant 0.000000e+00 : f32
    %12 = vector.broadcast %cst : f32 to vector<8x16xf32>
    %13 = vector.broadcast %cst_4 : f32 to vector<8x16xf32>
    %14 = arith.select %11, %12, %13 : vector<8x16xi1>, vector<8x16xf32>
    %15 = arith.truncf %14 : vector<8x16xf32> to vector<8x16xbf16>
    %cst_5 = arith.constant dense<0.000000e+00> : vector<8x32xf32>
    %16 = tpu.matmul %15, %4, %cst_5 {dimension_numbers = #tpu.dot_dimension_numbers<[1], [0], [0], [1], [0, 0, 1, 1], [], []>} : vector<8x16xbf16>, vector<16x32xbf16>, vector<8x32xf32> -> vector<8x32xf32>
    %c0_6 = arith.constant 0 : index
    %c0_7 = arith.constant 0 : index
    %17 = vector.load %arg3[%c0_6, %c0_7] : memref<8x4xf32, #tpu.memory_space<vmem>>, vector<8x4xf32>
    %18 = arith.truncf %17 : vector<8x4xf32> to vector<8x4xbf16>
    %c0_8 = arith.constant 0 : index
    %c0_9 = arith.constant 0 : index
    %19 = vector.load %arg5[%c0_8, %c0_9] : memref<1x8xf32, #tpu.memory_space<vmem>>, vector<1x8xf32>
    %20 = arith.truncf %19 : vector<1x8xf32> to vector<1x8xbf16>
    %c0_10 = arith.constant 0 : index
    %c0_11 = arith.constant 0 : index
    %21 = vector.load %arg4[%c0_10, %c0_11] : memref<8x32xf32, #tpu.memory_space<vmem>>, vector<8x32xf32>
    %22 = arith.truncf %21 : vector<8x32xf32> to vector<8x32xbf16>
    %23 = arith.truncf %16 : vector<8x32xf32> to vector<8x32xbf16>
    %c0_12 = arith.constant 0 : index
    %c0_13 = arith.constant 0 : index
    %c0_14 = arith.constant 0 : index
    %24 = vector.load %arg6[%c0_12, %c0_13, %c0_14] : memref<3x32x32xbf16, #tpu.memory_space<vmem>>, vector<1x32x32xbf16>
    %25 = vector.shape_cast %24 : vector<1x32x32xbf16> to vector<32x32xbf16>
    %cst_15 = arith.constant dense<0.000000e+00> : vector<8x32xf32>
    %26 = tpu.matmul %23, %25, %cst_15 {dimension_numbers = #tpu.dot_dimension_numbers<[1], [0], [0], [1], [0, 0, 1, 1], [], []>} : vector<8x32xbf16>, vector<32x32xbf16>, vector<8x32xf32> -> vector<8x32xf32>
    %c0_16 = arith.constant 0 : index
    %c0_17 = arith.constant 0 : index
    %c0_18 = arith.constant 0 : index
    %27 = vector.load %arg7[%c0_16, %c0_17, %c0_18] : memref<3x4x32xbf16, #tpu.memory_space<vmem>>, vector<1x4x32xbf16>
    %28 = vector.shape_cast %27 : vector<1x4x32xbf16> to vector<4x32xbf16>
    %cst_19 = arith.constant dense<0.000000e+00> : vector<8x32xf32>
    %29 = tpu.matmul %18, %28, %cst_19 {dimension_numbers = #tpu.dot_dimension_numbers<[1], [0], [0], [1], [0, 0, 1, 1], [], []>} : vector<8x4xbf16>, vector<4x32xbf16>, vector<8x32xf32> -> vector<8x32xf32>
    %30 = arith.addf %26, %29 : vector<8x32xf32>
    %c0_20 = arith.constant 0 : index
    %c0_21 = arith.constant 0 : index
    %c0_22 = arith.constant 0 : index
    %31 = vector.load %arg8[%c0_20, %c0_21, %c0_22] : memref<3x8x32xbf16, #tpu.memory_space<vmem>>, vector<1x8x32xbf16>
    %32 = vector.shape_cast %31 : vector<1x8x32xbf16> to vector<8x32xbf16>
    %cst_23 = arith.constant dense<0.000000e+00> : vector<1x32xf32>
    %33 = tpu.matmul %20, %32, %cst_23 {dimension_numbers = #tpu.dot_dimension_numbers<[1], [0], [0], [1], [0, 0, 1, 1], [], []>} : vector<1x8xbf16>, vector<8x32xbf16>, vector<1x32xf32> -> vector<1x32xf32>
    %34 = vector.broadcast %33 : vector<1x32xf32> to vector<8x32xf32>
    %35 = arith.addf %30, %34 : vector<8x32xf32>
    %c0_24 = arith.constant 0 : index
    %c0_25 = arith.constant 0 : index
    %c0_26 = arith.constant 0 : index
    %36 = vector.load %arg10[%c0_24, %c0_25, %c0_26] : memref<3x1x32xf32, #tpu.memory_space<vmem>>, vector<1x1x32xf32>
    %37 = vector.shape_cast %36 : vector<1x1x32xf32> to vector<1x32xf32>
    %38 = vector.broadcast %37 : vector<1x32xf32> to vector<8x32xf32>
    %39 = arith.addf %35, %38 : vector<8x32xf32>
    %c0_27 = arith.constant 0 : index
    %c0_28 = arith.constant 0 : index
    %c0_29 = arith.constant 0 : index
    %40 = vector.load %arg9[%c0_27, %c0_28, %c0_29] : memref<3x32x32xbf16, #tpu.memory_space<vmem>>, vector<1x32x32xbf16>
    %41 = vector.shape_cast %40 : vector<1x32x32xbf16> to vector<32x32xbf16>
    %cst_30 = arith.constant dense<0.000000e+00> : vector<8x32xf32>
    %42 = tpu.matmul %22, %41, %cst_30 {dimension_numbers = #tpu.dot_dimension_numbers<[1], [0], [0], [1], [0, 0, 1, 1], [], []>} : vector<8x32xbf16>, vector<32x32xbf16>, vector<8x32xf32> -> vector<8x32xf32>
    %c0_31 = arith.constant 0 : index
    %c0_32 = arith.constant 0 : index
    %c0_33 = arith.constant 0 : index
    %43 = vector.load %arg11[%c0_31, %c0_32, %c0_33] : memref<3x1x32xf32, #tpu.memory_space<vmem>>, vector<1x1x32xf32>
    %44 = vector.shape_cast %43 : vector<1x1x32xf32> to vector<1x32xf32>
    %45 = vector.broadcast %44 : vector<1x32xf32> to vector<8x32xf32>
    %46 = arith.addf %42, %45 : vector<8x32xf32>
    %47 = arith.addf %39, %46 : vector<8x32xf32>
    %48 = arith.negf %47 : vector<8x32xf32>
    %49 = math.exp %48 : vector<8x32xf32>
    %cst_34 = arith.constant 1.000000e+00 : f32
    %50 = vector.broadcast %cst_34 : f32 to vector<8x32xf32>
    %51 = arith.addf %50, %49 : vector<8x32xf32>
    %52 = arith.divf %50, %51 : vector<8x32xf32>
    %c1 = arith.constant 1 : index
    %c0_35 = arith.constant 0 : index
    %c0_36 = arith.constant 0 : index
    %53 = vector.load %arg6[%c1, %c0_35, %c0_36] : memref<3x32x32xbf16, #tpu.memory_space<vmem>>, vector<1x32x32xbf16>
    %54 = vector.shape_cast %53 : vector<1x32x32xbf16> to vector<32x32xbf16>
    %cst_37 = arith.constant dense<0.000000e+00> : vector<8x32xf32>
    %55 = tpu.matmul %23, %54, %cst_37 {dimension_numbers = #tpu.dot_dimension_numbers<[1], [0], [0], [1], [0, 0, 1, 1], [], []>} : vector<8x32xbf16>, vector<32x32xbf16>, vector<8x32xf32> -> vector<8x32xf32>
    %c1_38 = arith.constant 1 : index
    %c0_39 = arith.constant 0 : index
    %c0_40 = arith.constant 0 : index
    %56 = vector.load %arg7[%c1_38, %c0_39, %c0_40] : memref<3x4x32xbf16, #tpu.memory_space<vmem>>, vector<1x4x32xbf16>
    %57 = vector.shape_cast %56 : vector<1x4x32xbf16> to vector<4x32xbf16>
    %cst_41 = arith.constant dense<0.000000e+00> : vector<8x32xf32>
    %58 = tpu.matmul %18, %57, %cst_41 {dimension_numbers = #tpu.dot_dimension_numbers<[1], [0], [0], [1], [0, 0, 1, 1], [], []>} : vector<8x4xbf16>, vector<4x32xbf16>, vector<8x32xf32> -> vector<8x32xf32>
    %59 = arith.addf %55, %58 : vector<8x32xf32>
    %c1_42 = arith.constant 1 : index
    %c0_43 = arith.constant 0 : index
    %c0_44 = arith.constant 0 : index
    %60 = vector.load %arg8[%c1_42, %c0_43, %c0_44] : memref<3x8x32xbf16, #tpu.memory_space<vmem>>, vector<1x8x32xbf16>
    %61 = vector.shape_cast %60 : vector<1x8x32xbf16> to vector<8x32xbf16>
    %cst_45 = arith.constant dense<0.000000e+00> : vector<1x32xf32>
    %62 = tpu.matmul %20, %61, %cst_45 {dimension_numbers = #tpu.dot_dimension_numbers<[1], [0], [0], [1], [0, 0, 1, 1], [], []>} : vector<1x8xbf16>, vector<8x32xbf16>, vector<1x32xf32> -> vector<1x32xf32>
    %63 = vector.broadcast %62 : vector<1x32xf32> to vector<8x32xf32>
    %64 = arith.addf %59, %63 : vector<8x32xf32>
    %c1_46 = arith.constant 1 : index
    %c0_47 = arith.constant 0 : index
    %c0_48 = arith.constant 0 : index
    %65 = vector.load %arg10[%c1_46, %c0_47, %c0_48] : memref<3x1x32xf32, #tpu.memory_space<vmem>>, vector<1x1x32xf32>
    %66 = vector.shape_cast %65 : vector<1x1x32xf32> to vector<1x32xf32>
    %67 = vector.broadcast %66 : vector<1x32xf32> to vector<8x32xf32>
    %68 = arith.addf %64, %67 : vector<8x32xf32>
    %c1_49 = arith.constant 1 : index
    %c0_50 = arith.constant 0 : index
    %c0_51 = arith.constant 0 : index
    %69 = vector.load %arg9[%c1_49, %c0_50, %c0_51] : memref<3x32x32xbf16, #tpu.memory_space<vmem>>, vector<1x32x32xbf16>
    %70 = vector.shape_cast %69 : vector<1x32x32xbf16> to vector<32x32xbf16>
    %cst_52 = arith.constant dense<0.000000e+00> : vector<8x32xf32>
    %71 = tpu.matmul %22, %70, %cst_52 {dimension_numbers = #tpu.dot_dimension_numbers<[1], [0], [0], [1], [0, 0, 1, 1], [], []>} : vector<8x32xbf16>, vector<32x32xbf16>, vector<8x32xf32> -> vector<8x32xf32>
    %c1_53 = arith.constant 1 : index
    %c0_54 = arith.constant 0 : index
    %c0_55 = arith.constant 0 : index
    %72 = vector.load %arg11[%c1_53, %c0_54, %c0_55] : memref<3x1x32xf32, #tpu.memory_space<vmem>>, vector<1x1x32xf32>
    %73 = vector.shape_cast %72 : vector<1x1x32xf32> to vector<1x32xf32>
    %74 = vector.broadcast %73 : vector<1x32xf32> to vector<8x32xf32>
    %75 = arith.addf %71, %74 : vector<8x32xf32>
    %76 = arith.addf %68, %75 : vector<8x32xf32>
    %77 = arith.negf %76 : vector<8x32xf32>
    %78 = math.exp %77 : vector<8x32xf32>
    %cst_56 = arith.constant 1.000000e+00 : f32
    %79 = vector.broadcast %cst_56 : f32 to vector<8x32xf32>
    %80 = arith.addf %79, %78 : vector<8x32xf32>
    %81 = arith.divf %79, %80 : vector<8x32xf32>
    %c2 = arith.constant 2 : index
    %c0_57 = arith.constant 0 : index
    %c0_58 = arith.constant 0 : index
    %82 = vector.load %arg6[%c2, %c0_57, %c0_58] : memref<3x32x32xbf16, #tpu.memory_space<vmem>>, vector<1x32x32xbf16>
    %83 = vector.shape_cast %82 : vector<1x32x32xbf16> to vector<32x32xbf16>
    %cst_59 = arith.constant dense<0.000000e+00> : vector<8x32xf32>
    %84 = tpu.matmul %23, %83, %cst_59 {dimension_numbers = #tpu.dot_dimension_numbers<[1], [0], [0], [1], [0, 0, 1, 1], [], []>} : vector<8x32xbf16>, vector<32x32xbf16>, vector<8x32xf32> -> vector<8x32xf32>
    %c2_60 = arith.constant 2 : index
    %c0_61 = arith.constant 0 : index
    %c0_62 = arith.constant 0 : index
    %85 = vector.load %arg7[%c2_60, %c0_61, %c0_62] : memref<3x4x32xbf16, #tpu.memory_space<vmem>>, vector<1x4x32xbf16>
    %86 = vector.shape_cast %85 : vector<1x4x32xbf16> to vector<4x32xbf16>
    %cst_63 = arith.constant dense<0.000000e+00> : vector<8x32xf32>
    %87 = tpu.matmul %18, %86, %cst_63 {dimension_numbers = #tpu.dot_dimension_numbers<[1], [0], [0], [1], [0, 0, 1, 1], [], []>} : vector<8x4xbf16>, vector<4x32xbf16>, vector<8x32xf32> -> vector<8x32xf32>
    %88 = arith.addf %84, %87 : vector<8x32xf32>
    %c2_64 = arith.constant 2 : index
    %c0_65 = arith.constant 0 : index
    %c0_66 = arith.constant 0 : index
    %89 = vector.load %arg8[%c2_64, %c0_65, %c0_66] : memref<3x8x32xbf16, #tpu.memory_space<vmem>>, vector<1x8x32xbf16>
    %90 = vector.shape_cast %89 : vector<1x8x32xbf16> to vector<8x32xbf16>
    %cst_67 = arith.constant dense<0.000000e+00> : vector<1x32xf32>
    %91 = tpu.matmul %20, %90, %cst_67 {dimension_numbers = #tpu.dot_dimension_numbers<[1], [0], [0], [1], [0, 0, 1, 1], [], []>} : vector<1x8xbf16>, vector<8x32xbf16>, vector<1x32xf32> -> vector<1x32xf32>
    %92 = vector.broadcast %91 : vector<1x32xf32> to vector<8x32xf32>
    %93 = arith.addf %88, %92 : vector<8x32xf32>
    %c2_68 = arith.constant 2 : index
    %c0_69 = arith.constant 0 : index
    %c0_70 = arith.constant 0 : index
    %94 = vector.load %arg10[%c2_68, %c0_69, %c0_70] : memref<3x1x32xf32, #tpu.memory_space<vmem>>, vector<1x1x32xf32>
    %95 = vector.shape_cast %94 : vector<1x1x32xf32> to vector<1x32xf32>
    %96 = vector.broadcast %95 : vector<1x32xf32> to vector<8x32xf32>
    %97 = arith.addf %93, %96 : vector<8x32xf32>
    %c2_71 = arith.constant 2 : index
    %c0_72 = arith.constant 0 : index
    %c0_73 = arith.constant 0 : index
    %98 = vector.load %arg9[%c2_71, %c0_72, %c0_73] : memref<3x32x32xbf16, #tpu.memory_space<vmem>>, vector<1x32x32xbf16>
    %99 = vector.shape_cast %98 : vector<1x32x32xbf16> to vector<32x32xbf16>
    %cst_74 = arith.constant dense<0.000000e+00> : vector<8x32xf32>
    %100 = tpu.matmul %22, %99, %cst_74 {dimension_numbers = #tpu.dot_dimension_numbers<[1], [0], [0], [1], [0, 0, 1, 1], [], []>} : vector<8x32xbf16>, vector<32x32xbf16>, vector<8x32xf32> -> vector<8x32xf32>
    %c2_75 = arith.constant 2 : index
    %c0_76 = arith.constant 0 : index
    %c0_77 = arith.constant 0 : index
    %101 = vector.load %arg11[%c2_75, %c0_76, %c0_77] : memref<3x1x32xf32, #tpu.memory_space<vmem>>, vector<1x1x32xf32>
    %102 = vector.shape_cast %101 : vector<1x1x32xf32> to vector<1x32xf32>
    %103 = vector.broadcast %102 : vector<1x32xf32> to vector<8x32xf32>
    %104 = arith.addf %100, %103 : vector<8x32xf32>
    %105 = arith.mulf %52, %104 : vector<8x32xf32>
    %106 = arith.addf %97, %105 : vector<8x32xf32>
    %107 = math.tanh %106 : vector<8x32xf32>
    %cst_78 = arith.constant 1.000000e+00 : f32
    %108 = vector.broadcast %cst_78 : f32 to vector<8x32xf32>
    %109 = arith.subf %108, %81 : vector<8x32xf32>
    %110 = arith.mulf %109, %107 : vector<8x32xf32>
    %111 = arith.mulf %81, %21 : vector<8x32xf32>
    %112 = arith.addf %110, %111 : vector<8x32xf32>
    %c0_79 = arith.constant 0 : index
    %c0_80 = arith.constant 0 : index
    %113 = vector.load %arg16[%c0_79, %c0_80] : memref<8x32xf32, #tpu.memory_space<vmem>>, vector<8x32xf32>
    tpu.vector_store %arg16[%c0_79, %c0_80], %112 {strides = array<i32>} : memref<8x32xf32, #tpu.memory_space<vmem>>, vector<8x32xf32>,
    %c8_i32_81 = arith.constant 8 : i32
    %114 = arith.muli %arg0, %c8_i32_81 : i32
    %115 = tpu.iota {dimensions = array<i32: 0>} : vector<8x1xi32>
    %116 = vector.broadcast %114 : i32 to vector<8x1xi32>
    %117 = arith.addi %116, %115 : vector<8x1xi32>
    %c8_i32_82 = arith.constant 8 : i32
    %118 = vector.broadcast %c8_i32_82 : i32 to vector<8x1xi32>
    %119 = arith.cmpi slt, %117, %118 : vector<8x1xi32>
    %c0_83 = arith.constant 0 : index
    %c0_84 = arith.constant 0 : index
    %120 = vector.load %arg18[%c0_83, %c0_84] : memref<1x32xf32, #tpu.memory_space<vmem>>, vector<1x32xf32>
    %cst_85 = arith.constant 0.000000e+00 : f32
    %121 = vector.shape_cast %119 : vector<8x1xi1> to vector<8x1xi1>
    %122 = vector.broadcast %121 : vector<8x1xi1> to vector<8x32xi1>
    %123 = vector.broadcast %cst_85 : f32 to vector<8x32xf32>
    %124 = arith.select %122, %112, %123 : vector<8x32xi1>, vector<8x32xf32>
    %cst_86 = arith.constant dense<0.000000e+00> : vector<32xf32>
    %125 = vector.multi_reduction <add>, %124, %cst_86 [0] : vector<8x32xf32> to vector<32xf32>
    %126 = vector.shape_cast %125 : vector<32xf32> to vector<1x32xf32>
    %127 = arith.addf %120, %126 : vector<1x32xf32>
    %c0_87 = arith.constant 0 : index
    %c0_88 = arith.constant 0 : index
    %128 = vector.load %arg18[%c0_87, %c0_88] : memref<1x32xf32, #tpu.memory_space<vmem>>, vector<1x32xf32>
    tpu.vector_store %arg18[%c0_87, %c0_88], %127 {strides = array<i32>} : memref<1x32xf32, #tpu.memory_space<vmem>>, vector<1x32xf32>,
    %c0_i32_89 = arith.constant 0 : i32
    %129 = arith.cmpi eq, %arg0, %c0_i32_89 : i32
    %130 = arith.extui %129 : i1 to i32
    %c0_i32_90 = arith.constant 0 : i32
    %131 = arith.cmpi ne, %130, %c0_i32_90 : i32
    scf.if %131 {
      %cst_91 = arith.constant dense<0.000000e+00> : vector<32xf32>
      %132 = vector.multi_reduction <add>, %3, %cst_91 [0] : vector<16x32xf32> to vector<32xf32>
      %133 = vector.shape_cast %132 : vector<32xf32> to vector<1x32xf32>
      %cst_92 = arith.constant 6.250000e-02 : f32
      %134 = vector.broadcast %cst_92 : f32 to vector<1x32xf32>
      %135 = arith.mulf %133, %134 : vector<1x32xf32>
      %136 = arith.truncf %135 : vector<1x32xf32> to vector<1x32xbf16>
      %c0_93 = arith.constant 0 : index
      %c0_94 = arith.constant 0 : index
      %137 = vector.load %arg18[%c0_93, %c0_94] : memref<1x32xf32, #tpu.memory_space<vmem>>, vector<1x32xf32>
      %cst_95 = arith.constant 1.250000e-01 : f32
      %138 = vector.broadcast %cst_95 : f32 to vector<1x32xf32>
      %139 = arith.mulf %137, %138 : vector<1x32xf32>
      %140 = arith.truncf %139 : vector<1x32xf32> to vector<1x32xbf16>
      %c0_96 = arith.constant 0 : index
      %c0_97 = arith.constant 0 : index
      %141 = vector.load %arg12[%c0_96, %c0_97] : memref<32x8xbf16, #tpu.memory_space<vmem>>, vector<32x8xbf16>
      %cst_98 = arith.constant dense<0.000000e+00> : vector<1x8xf32>
      %142 = tpu.matmul %136, %141, %cst_98 {dimension_numbers = #tpu.dot_dimension_numbers<[1], [0], [0], [1], [0, 0, 1, 1], [], []>} : vector<1x32xbf16>, vector<32x8xbf16>, vector<1x8xf32> -> vector<1x8xf32>
      %c0_99 = arith.constant 0 : index
      %c0_100 = arith.constant 0 : index
      %143 = vector.load %arg13[%c0_99, %c0_100] : memref<32x8xbf16, #tpu.memory_space<vmem>>, vector<32x8xbf16>
      %cst_101 = arith.constant dense<0.000000e+00> : vector<1x8xf32>
      %144 = tpu.matmul %140, %143, %cst_101 {dimension_numbers = #tpu.dot_dimension_numbers<[1], [0], [0], [1], [0, 0, 1, 1], [], []>} : vector<1x32xbf16>, vector<32x8xbf16>, vector<1x8xf32> -> vector<1x8xf32>
      %145 = arith.addf %142, %144 : vector<1x8xf32>
      %c0_102 = arith.constant 0 : index
      %c0_103 = arith.constant 0 : index
      %146 = vector.load %arg14[%c0_102, %c0_103] : memref<8x8xbf16, #tpu.memory_space<vmem>>, vector<8x8xbf16>
      %cst_104 = arith.constant dense<0.000000e+00> : vector<1x8xf32>
      %147 = tpu.matmul %20, %146, %cst_104 {dimension_numbers = #tpu.dot_dimension_numbers<[1], [0], [0], [1], [0, 0, 1, 1], [], []>} : vector<1x8xbf16>, vector<8x8xbf16>, vector<1x8xf32> -> vector<1x8xf32>
      %148 = arith.addf %145, %147 : vector<1x8xf32>
      %c0_105 = arith.constant 0 : index
      %c0_106 = arith.constant 0 : index
      %149 = vector.load %arg15[%c0_105, %c0_106] : memref<1x8xf32, #tpu.memory_space<vmem>>, vector<1x8xf32>
      %150 = arith.addf %148, %149 : vector<1x8xf32>
      %cst_107 = arith.constant 0.000000e+00 : f32
      %151 = vector.broadcast %cst_107 : f32 to vector<1x8xf32>
      %152 = arith.maximumf %150, %151 : vector<1x8xf32>
      %c0_108 = arith.constant 0 : index
      %c0_109 = arith.constant 0 : index
      %153 = vector.load %arg17[%c0_108, %c0_109] : memref<1x8xf32, #tpu.memory_space<vmem>>, vector<1x8xf32>
      tpu.vector_store %arg17[%c0_108, %c0_109], %152 {strides = array<i32>} : memref<1x8xf32, #tpu.memory_space<vmem>>, vector<1x8xf32>,
    } else {
    }
    return
  }
  func.func @transform_0(%arg0: i32) -> (i32, i32) {
    %c0_i32 = arith.constant 0 : i32
    %c0_i32_0 = arith.constant 0 : i32
    %c0_i32_1 = arith.constant 0 : i32
    return %c0_i32, %c0_i32_0 : i32, i32
  }
  func.func @transform_1(%arg0: i32) -> (i32, i32) {
    %c0_i32 = arith.constant 0 : i32
    %c0_i32_0 = arith.constant 0 : i32
    %c0_i32_1 = arith.constant 0 : i32
    return %c0_i32, %c0_i32_0 : i32, i32
  }
  func.func @transform_2(%arg0: i32) -> (i32, i32) {
    %c0_i32 = arith.constant 0 : i32
    %c0_i32_0 = arith.constant 0 : i32
    return %arg0, %c0_i32 : i32, i32
  }
  func.func @transform_3(%arg0: i32) -> (i32, i32) {
    %c0_i32 = arith.constant 0 : i32
    %c0_i32_0 = arith.constant 0 : i32
    return %arg0, %c0_i32 : i32, i32
  }
  func.func @transform_4(%arg0: i32) -> (i32, i32) {
    %c0_i32 = arith.constant 0 : i32
    %c0_i32_0 = arith.constant 0 : i32
    %c0_i32_1 = arith.constant 0 : i32
    return %c0_i32, %c0_i32_0 : i32, i32
  }
  func.func @transform_5(%arg0: i32) -> (i32, i32, i32) {
    %c0_i32 = arith.constant 0 : i32
    %c0_i32_0 = arith.constant 0 : i32
    %c0_i32_1 = arith.constant 0 : i32
    %c0_i32_2 = arith.constant 0 : i32
    return %c0_i32, %c0_i32_0, %c0_i32_1 : i32, i32, i32
  }
  func.func @transform_6(%arg0: i32) -> (i32, i32, i32) {
    %c0_i32 = arith.constant 0 : i32
    %c0_i32_0 = arith.constant 0 : i32
    %c0_i32_1 = arith.constant 0 : i32
    %c0_i32_2 = arith.constant 0 : i32
    return %c0_i32, %c0_i32_0, %c0_i32_1 : i32, i32, i32
  }
  func.func @transform_7(%arg0: i32) -> (i32, i32, i32) {
    %c0_i32 = arith.constant 0 : i32
    %c0_i32_0 = arith.constant 0 : i32
    %c0_i32_1 = arith.constant 0 : i32
    %c0_i32_2 = arith.constant 0 : i32
    return %c0_i32, %c0_i32_0, %c0_i32_1 : i32, i32, i32
  }
  func.func @transform_8(%arg0: i32) -> (i32, i32, i32) {
    %c0_i32 = arith.constant 0 : i32
    %c0_i32_0 = arith.constant 0 : i32
    %c0_i32_1 = arith.constant 0 : i32
    %c0_i32_2 = arith.constant 0 : i32
    return %c0_i32, %c0_i32_0, %c0_i32_1 : i32, i32, i32
  }
  func.func @transform_9(%arg0: i32) -> (i32, i32, i32) {
    %c0_i32 = arith.constant 0 : i32
    %c0_i32_0 = arith.constant 0 : i32
    %c0_i32_1 = arith.constant 0 : i32
    %c0_i32_2 = arith.constant 0 : i32
    return %c0_i32, %c0_i32_0, %c0_i32_1 : i32, i32, i32
  }
  func.func @transform_10(%arg0: i32) -> (i32, i32, i32) {
    %c0_i32 = arith.constant 0 : i32
    %c0_i32_0 = arith.constant 0 : i32
    %c0_i32_1 = arith.constant 0 : i32
    %c0_i32_2 = arith.constant 0 : i32
    return %c0_i32, %c0_i32_0, %c0_i32_1 : i32, i32, i32
  }
  func.func @transform_11(%arg0: i32) -> (i32, i32) {
    %c0_i32 = arith.constant 0 : i32
    %c0_i32_0 = arith.constant 0 : i32
    %c0_i32_1 = arith.constant 0 : i32
    return %c0_i32, %c0_i32_0 : i32, i32
  }
  func.func @transform_12(%arg0: i32) -> (i32, i32) {
    %c0_i32 = arith.constant 0 : i32
    %c0_i32_0 = arith.constant 0 : i32
    %c0_i32_1 = arith.constant 0 : i32
    return %c0_i32, %c0_i32_0 : i32, i32
  }
  func.func @transform_13(%arg0: i32) -> (i32, i32) {
    %c0_i32 = arith.constant 0 : i32
    %c0_i32_0 = arith.constant 0 : i32
    %c0_i32_1 = arith.constant 0 : i32
    return %c0_i32, %c0_i32_0 : i32, i32
  }
  func.func @transform_14(%arg0: i32) -> (i32, i32) {
    %c0_i32 = arith.constant 0 : i32
    %c0_i32_0 = arith.constant 0 : i32
    %c0_i32_1 = arith.constant 0 : i32
    return %c0_i32, %c0_i32_0 : i32, i32
  }
  func.func @transform_15(%arg0: i32) -> (i32, i32) {
    %c0_i32 = arith.constant 0 : i32
    %c0_i32_0 = arith.constant 0 : i32
    return %arg0, %c0_i32 : i32, i32
  }
  func.func @transform_16(%arg0: i32) -> (i32, i32) {
    %c0_i32 = arith.constant 0 : i32
    %c0_i32_0 = arith.constant 0 : i32
    %c0_i32_1 = arith.constant 0 : i32
    return %c0_i32, %c0_i32_0 : i32, i32
  }
}

module attributes {stable_mosaic.version = 11 : i64} {
  func.func @_edge_gru_kernel(%arg0: i32, %arg1: memref<16x1xi32, #tpu.memory_space<vmem>>, %arg2: memref<16x6xf32, #tpu.memory_space<vmem>>, %arg3: memref<8x4xf32, #tpu.memory_space<vmem>>, %arg4: memref<16x32xf32, #tpu.memory_space<vmem>>, %arg5: memref<1x8xf32, #tpu.memory_space<vmem>>, %arg6: memref<3x6x32xbf16, #tpu.memory_space<vmem>>, %arg7: memref<3x4x32xbf16, #tpu.memory_space<vmem>>, %arg8: memref<3x8x32xbf16, #tpu.memory_space<vmem>>, %arg9: memref<3x32x32xbf16, #tpu.memory_space<vmem>>, %arg10: memref<3x1x32xf32, #tpu.memory_space<vmem>>, %arg11: memref<3x1x32xf32, #tpu.memory_space<vmem>>, %arg12: memref<16x32xf32, #tpu.memory_space<vmem>>) attributes {dimension_semantics = [#tpu.dimension_semantics<parallel>], iteration_bounds = array<i64: 1>, scalar_prefetch = 0 : i64, scratch_operands = 0 : i64, tpu.core_type = #tpu.core_type<tc>, window_params = [{transform_indices = @transform_0, window_bounds = array<i64: 16, 1>}, {transform_indices = @transform_1, window_bounds = array<i64: 16, 6>}, {pipeline_mode = #tpu.pipeline_mode<synchronous>, transform_indices = @transform_2, window_bounds = array<i64: 8, 4>}, {transform_indices = @transform_3, window_bounds = array<i64: 16, 32>}, {pipeline_mode = #tpu.pipeline_mode<synchronous>, transform_indices = @transform_4, window_bounds = array<i64: 1, 8>}, {pipeline_mode = #tpu.pipeline_mode<synchronous>, transform_indices = @transform_5, window_bounds = array<i64: 3, 6, 32>}, {pipeline_mode = #tpu.pipeline_mode<synchronous>, transform_indices = @transform_6, window_bounds = array<i64: 3, 4, 32>}, {pipeline_mode = #tpu.pipeline_mode<synchronous>, transform_indices = @transform_7, window_bounds = array<i64: 3, 8, 32>}, {pipeline_mode = #tpu.pipeline_mode<synchronous>, transform_indices = @transform_8, window_bounds = array<i64: 3, 32, 32>}, {pipeline_mode = #tpu.pipeline_mode<synchronous>, transform_indices = @transform_9, window_bounds = array<i64: 3, 1, 32>}, {pipeline_mode = #tpu.pipeline_mode<synchronous>, transform_indices = @transform_10, window_bounds = array<i64: 3, 1, 32>}, {transform_indices = @transform_11, window_bounds = array<i64: 16, 32>}]} {
    %c0 = arith.constant 0 : index
    %c0_0 = arith.constant 0 : index
    %0 = vector.load %arg1[%c0, %c0_0] : memref<16x1xi32, #tpu.memory_space<vmem>>, vector<16x1xi32>
    %1 = tpu.iota {dimensions = array<i32: 1>} : vector<16x8xi32>
    %2 = vector.broadcast %0 : vector<16x1xi32> to vector<16x8xi32>
    %3 = arith.cmpi eq, %1, %2 : vector<16x8xi32>
    %cst = arith.constant 1.000000e+00 : f32
    %cst_1 = arith.constant 0.000000e+00 : f32
    %4 = vector.broadcast %cst : f32 to vector<16x8xf32>
    %5 = vector.broadcast %cst_1 : f32 to vector<16x8xf32>
    %6 = arith.select %3, %4, %5 : vector<16x8xi1>, vector<16x8xf32>
    %7 = arith.truncf %6 : vector<16x8xf32> to vector<16x8xbf16>
    %c0_2 = arith.constant 0 : index
    %c0_3 = arith.constant 0 : index
    %8 = vector.load %arg3[%c0_2, %c0_3] : memref<8x4xf32, #tpu.memory_space<vmem>>, vector<8x4xf32>
    %9 = arith.truncf %8 : vector<8x4xf32> to vector<8x4xbf16>
    %cst_4 = arith.constant dense<0.000000e+00> : vector<16x4xf32>
    %10 = tpu.matmul %7, %9, %cst_4 {dimension_numbers = #tpu.dot_dimension_numbers<[1], [0], [0], [1], [0, 0, 1, 1], [], []>} : vector<16x8xbf16>, vector<8x4xbf16>, vector<16x4xf32> -> vector<16x4xf32>
    %c0_5 = arith.constant 0 : index
    %c0_6 = arith.constant 0 : index
    %11 = vector.load %arg2[%c0_5, %c0_6] : memref<16x6xf32, #tpu.memory_space<vmem>>, vector<16x6xf32>
    %12 = arith.truncf %11 : vector<16x6xf32> to vector<16x6xbf16>
    %13 = arith.truncf %10 : vector<16x4xf32> to vector<16x4xbf16>
    %c0_7 = arith.constant 0 : index
    %c0_8 = arith.constant 0 : index
    %14 = vector.load %arg5[%c0_7, %c0_8] : memref<1x8xf32, #tpu.memory_space<vmem>>, vector<1x8xf32>
    %15 = arith.truncf %14 : vector<1x8xf32> to vector<1x8xbf16>
    %c0_9 = arith.constant 0 : index
    %c0_10 = arith.constant 0 : index
    %16 = vector.load %arg4[%c0_9, %c0_10] : memref<16x32xf32, #tpu.memory_space<vmem>>, vector<16x32xf32>
    %17 = arith.truncf %16 : vector<16x32xf32> to vector<16x32xbf16>
    %c0_11 = arith.constant 0 : index
    %c0_12 = arith.constant 0 : index
    %c0_13 = arith.constant 0 : index
    %18 = vector.load %arg6[%c0_11, %c0_12, %c0_13] : memref<3x6x32xbf16, #tpu.memory_space<vmem>>, vector<1x6x32xbf16>
    %19 = vector.shape_cast %18 : vector<1x6x32xbf16> to vector<6x32xbf16>
    %cst_14 = arith.constant dense<0.000000e+00> : vector<16x32xf32>
    %20 = tpu.matmul %12, %19, %cst_14 {dimension_numbers = #tpu.dot_dimension_numbers<[1], [0], [0], [1], [0, 0, 1, 1], [], []>} : vector<16x6xbf16>, vector<6x32xbf16>, vector<16x32xf32> -> vector<16x32xf32>
    %c0_15 = arith.constant 0 : index
    %c0_16 = arith.constant 0 : index
    %c0_17 = arith.constant 0 : index
    %21 = vector.load %arg7[%c0_15, %c0_16, %c0_17] : memref<3x4x32xbf16, #tpu.memory_space<vmem>>, vector<1x4x32xbf16>
    %22 = vector.shape_cast %21 : vector<1x4x32xbf16> to vector<4x32xbf16>
    %cst_18 = arith.constant dense<0.000000e+00> : vector<16x32xf32>
    %23 = tpu.matmul %13, %22, %cst_18 {dimension_numbers = #tpu.dot_dimension_numbers<[1], [0], [0], [1], [0, 0, 1, 1], [], []>} : vector<16x4xbf16>, vector<4x32xbf16>, vector<16x32xf32> -> vector<16x32xf32>
    %24 = arith.addf %20, %23 : vector<16x32xf32>
    %c0_19 = arith.constant 0 : index
    %c0_20 = arith.constant 0 : index
    %c0_21 = arith.constant 0 : index
    %25 = vector.load %arg8[%c0_19, %c0_20, %c0_21] : memref<3x8x32xbf16, #tpu.memory_space<vmem>>, vector<1x8x32xbf16>
    %26 = vector.shape_cast %25 : vector<1x8x32xbf16> to vector<8x32xbf16>
    %cst_22 = arith.constant dense<0.000000e+00> : vector<1x32xf32>
    %27 = tpu.matmul %15, %26, %cst_22 {dimension_numbers = #tpu.dot_dimension_numbers<[1], [0], [0], [1], [0, 0, 1, 1], [], []>} : vector<1x8xbf16>, vector<8x32xbf16>, vector<1x32xf32> -> vector<1x32xf32>
    %28 = vector.broadcast %27 : vector<1x32xf32> to vector<16x32xf32>
    %29 = arith.addf %24, %28 : vector<16x32xf32>
    %c0_23 = arith.constant 0 : index
    %c0_24 = arith.constant 0 : index
    %c0_25 = arith.constant 0 : index
    %30 = vector.load %arg10[%c0_23, %c0_24, %c0_25] : memref<3x1x32xf32, #tpu.memory_space<vmem>>, vector<1x1x32xf32>
    %31 = vector.shape_cast %30 : vector<1x1x32xf32> to vector<1x32xf32>
    %32 = vector.broadcast %31 : vector<1x32xf32> to vector<16x32xf32>
    %33 = arith.addf %29, %32 : vector<16x32xf32>
    %c0_26 = arith.constant 0 : index
    %c0_27 = arith.constant 0 : index
    %c0_28 = arith.constant 0 : index
    %34 = vector.load %arg9[%c0_26, %c0_27, %c0_28] : memref<3x32x32xbf16, #tpu.memory_space<vmem>>, vector<1x32x32xbf16>
    %35 = vector.shape_cast %34 : vector<1x32x32xbf16> to vector<32x32xbf16>
    %cst_29 = arith.constant dense<0.000000e+00> : vector<16x32xf32>
    %36 = tpu.matmul %17, %35, %cst_29 {dimension_numbers = #tpu.dot_dimension_numbers<[1], [0], [0], [1], [0, 0, 1, 1], [], []>} : vector<16x32xbf16>, vector<32x32xbf16>, vector<16x32xf32> -> vector<16x32xf32>
    %c0_30 = arith.constant 0 : index
    %c0_31 = arith.constant 0 : index
    %c0_32 = arith.constant 0 : index
    %37 = vector.load %arg11[%c0_30, %c0_31, %c0_32] : memref<3x1x32xf32, #tpu.memory_space<vmem>>, vector<1x1x32xf32>
    %38 = vector.shape_cast %37 : vector<1x1x32xf32> to vector<1x32xf32>
    %39 = vector.broadcast %38 : vector<1x32xf32> to vector<16x32xf32>
    %40 = arith.addf %36, %39 : vector<16x32xf32>
    %41 = arith.addf %33, %40 : vector<16x32xf32>
    %42 = arith.negf %41 : vector<16x32xf32>
    %43 = math.exp %42 : vector<16x32xf32>
    %cst_33 = arith.constant 1.000000e+00 : f32
    %44 = vector.broadcast %cst_33 : f32 to vector<16x32xf32>
    %45 = arith.addf %44, %43 : vector<16x32xf32>
    %46 = arith.divf %44, %45 : vector<16x32xf32>
    %c1 = arith.constant 1 : index
    %c0_34 = arith.constant 0 : index
    %c0_35 = arith.constant 0 : index
    %47 = vector.load %arg6[%c1, %c0_34, %c0_35] : memref<3x6x32xbf16, #tpu.memory_space<vmem>>, vector<1x6x32xbf16>
    %48 = vector.shape_cast %47 : vector<1x6x32xbf16> to vector<6x32xbf16>
    %cst_36 = arith.constant dense<0.000000e+00> : vector<16x32xf32>
    %49 = tpu.matmul %12, %48, %cst_36 {dimension_numbers = #tpu.dot_dimension_numbers<[1], [0], [0], [1], [0, 0, 1, 1], [], []>} : vector<16x6xbf16>, vector<6x32xbf16>, vector<16x32xf32> -> vector<16x32xf32>
    %c1_37 = arith.constant 1 : index
    %c0_38 = arith.constant 0 : index
    %c0_39 = arith.constant 0 : index
    %50 = vector.load %arg7[%c1_37, %c0_38, %c0_39] : memref<3x4x32xbf16, #tpu.memory_space<vmem>>, vector<1x4x32xbf16>
    %51 = vector.shape_cast %50 : vector<1x4x32xbf16> to vector<4x32xbf16>
    %cst_40 = arith.constant dense<0.000000e+00> : vector<16x32xf32>
    %52 = tpu.matmul %13, %51, %cst_40 {dimension_numbers = #tpu.dot_dimension_numbers<[1], [0], [0], [1], [0, 0, 1, 1], [], []>} : vector<16x4xbf16>, vector<4x32xbf16>, vector<16x32xf32> -> vector<16x32xf32>
    %53 = arith.addf %49, %52 : vector<16x32xf32>
    %c1_41 = arith.constant 1 : index
    %c0_42 = arith.constant 0 : index
    %c0_43 = arith.constant 0 : index
    %54 = vector.load %arg8[%c1_41, %c0_42, %c0_43] : memref<3x8x32xbf16, #tpu.memory_space<vmem>>, vector<1x8x32xbf16>
    %55 = vector.shape_cast %54 : vector<1x8x32xbf16> to vector<8x32xbf16>
    %cst_44 = arith.constant dense<0.000000e+00> : vector<1x32xf32>
    %56 = tpu.matmul %15, %55, %cst_44 {dimension_numbers = #tpu.dot_dimension_numbers<[1], [0], [0], [1], [0, 0, 1, 1], [], []>} : vector<1x8xbf16>, vector<8x32xbf16>, vector<1x32xf32> -> vector<1x32xf32>
    %57 = vector.broadcast %56 : vector<1x32xf32> to vector<16x32xf32>
    %58 = arith.addf %53, %57 : vector<16x32xf32>
    %c1_45 = arith.constant 1 : index
    %c0_46 = arith.constant 0 : index
    %c0_47 = arith.constant 0 : index
    %59 = vector.load %arg10[%c1_45, %c0_46, %c0_47] : memref<3x1x32xf32, #tpu.memory_space<vmem>>, vector<1x1x32xf32>
    %60 = vector.shape_cast %59 : vector<1x1x32xf32> to vector<1x32xf32>
    %61 = vector.broadcast %60 : vector<1x32xf32> to vector<16x32xf32>
    %62 = arith.addf %58, %61 : vector<16x32xf32>
    %c1_48 = arith.constant 1 : index
    %c0_49 = arith.constant 0 : index
    %c0_50 = arith.constant 0 : index
    %63 = vector.load %arg9[%c1_48, %c0_49, %c0_50] : memref<3x32x32xbf16, #tpu.memory_space<vmem>>, vector<1x32x32xbf16>
    %64 = vector.shape_cast %63 : vector<1x32x32xbf16> to vector<32x32xbf16>
    %cst_51 = arith.constant dense<0.000000e+00> : vector<16x32xf32>
    %65 = tpu.matmul %17, %64, %cst_51 {dimension_numbers = #tpu.dot_dimension_numbers<[1], [0], [0], [1], [0, 0, 1, 1], [], []>} : vector<16x32xbf16>, vector<32x32xbf16>, vector<16x32xf32> -> vector<16x32xf32>
    %c1_52 = arith.constant 1 : index
    %c0_53 = arith.constant 0 : index
    %c0_54 = arith.constant 0 : index
    %66 = vector.load %arg11[%c1_52, %c0_53, %c0_54] : memref<3x1x32xf32, #tpu.memory_space<vmem>>, vector<1x1x32xf32>
    %67 = vector.shape_cast %66 : vector<1x1x32xf32> to vector<1x32xf32>
    %68 = vector.broadcast %67 : vector<1x32xf32> to vector<16x32xf32>
    %69 = arith.addf %65, %68 : vector<16x32xf32>
    %70 = arith.addf %62, %69 : vector<16x32xf32>
    %71 = arith.negf %70 : vector<16x32xf32>
    %72 = math.exp %71 : vector<16x32xf32>
    %cst_55 = arith.constant 1.000000e+00 : f32
    %73 = vector.broadcast %cst_55 : f32 to vector<16x32xf32>
    %74 = arith.addf %73, %72 : vector<16x32xf32>
    %75 = arith.divf %73, %74 : vector<16x32xf32>
    %c2 = arith.constant 2 : index
    %c0_56 = arith.constant 0 : index
    %c0_57 = arith.constant 0 : index
    %76 = vector.load %arg6[%c2, %c0_56, %c0_57] : memref<3x6x32xbf16, #tpu.memory_space<vmem>>, vector<1x6x32xbf16>
    %77 = vector.shape_cast %76 : vector<1x6x32xbf16> to vector<6x32xbf16>
    %cst_58 = arith.constant dense<0.000000e+00> : vector<16x32xf32>
    %78 = tpu.matmul %12, %77, %cst_58 {dimension_numbers = #tpu.dot_dimension_numbers<[1], [0], [0], [1], [0, 0, 1, 1], [], []>} : vector<16x6xbf16>, vector<6x32xbf16>, vector<16x32xf32> -> vector<16x32xf32>
    %c2_59 = arith.constant 2 : index
    %c0_60 = arith.constant 0 : index
    %c0_61 = arith.constant 0 : index
    %79 = vector.load %arg7[%c2_59, %c0_60, %c0_61] : memref<3x4x32xbf16, #tpu.memory_space<vmem>>, vector<1x4x32xbf16>
    %80 = vector.shape_cast %79 : vector<1x4x32xbf16> to vector<4x32xbf16>
    %cst_62 = arith.constant dense<0.000000e+00> : vector<16x32xf32>
    %81 = tpu.matmul %13, %80, %cst_62 {dimension_numbers = #tpu.dot_dimension_numbers<[1], [0], [0], [1], [0, 0, 1, 1], [], []>} : vector<16x4xbf16>, vector<4x32xbf16>, vector<16x32xf32> -> vector<16x32xf32>
    %82 = arith.addf %78, %81 : vector<16x32xf32>
    %c2_63 = arith.constant 2 : index
    %c0_64 = arith.constant 0 : index
    %c0_65 = arith.constant 0 : index
    %83 = vector.load %arg8[%c2_63, %c0_64, %c0_65] : memref<3x8x32xbf16, #tpu.memory_space<vmem>>, vector<1x8x32xbf16>
    %84 = vector.shape_cast %83 : vector<1x8x32xbf16> to vector<8x32xbf16>
    %cst_66 = arith.constant dense<0.000000e+00> : vector<1x32xf32>
    %85 = tpu.matmul %15, %84, %cst_66 {dimension_numbers = #tpu.dot_dimension_numbers<[1], [0], [0], [1], [0, 0, 1, 1], [], []>} : vector<1x8xbf16>, vector<8x32xbf16>, vector<1x32xf32> -> vector<1x32xf32>
    %86 = vector.broadcast %85 : vector<1x32xf32> to vector<16x32xf32>
    %87 = arith.addf %82, %86 : vector<16x32xf32>
    %c2_67 = arith.constant 2 : index
    %c0_68 = arith.constant 0 : index
    %c0_69 = arith.constant 0 : index
    %88 = vector.load %arg10[%c2_67, %c0_68, %c0_69] : memref<3x1x32xf32, #tpu.memory_space<vmem>>, vector<1x1x32xf32>
    %89 = vector.shape_cast %88 : vector<1x1x32xf32> to vector<1x32xf32>
    %90 = vector.broadcast %89 : vector<1x32xf32> to vector<16x32xf32>
    %91 = arith.addf %87, %90 : vector<16x32xf32>
    %c2_70 = arith.constant 2 : index
    %c0_71 = arith.constant 0 : index
    %c0_72 = arith.constant 0 : index
    %92 = vector.load %arg9[%c2_70, %c0_71, %c0_72] : memref<3x32x32xbf16, #tpu.memory_space<vmem>>, vector<1x32x32xbf16>
    %93 = vector.shape_cast %92 : vector<1x32x32xbf16> to vector<32x32xbf16>
    %cst_73 = arith.constant dense<0.000000e+00> : vector<16x32xf32>
    %94 = tpu.matmul %17, %93, %cst_73 {dimension_numbers = #tpu.dot_dimension_numbers<[1], [0], [0], [1], [0, 0, 1, 1], [], []>} : vector<16x32xbf16>, vector<32x32xbf16>, vector<16x32xf32> -> vector<16x32xf32>
    %c2_74 = arith.constant 2 : index
    %c0_75 = arith.constant 0 : index
    %c0_76 = arith.constant 0 : index
    %95 = vector.load %arg11[%c2_74, %c0_75, %c0_76] : memref<3x1x32xf32, #tpu.memory_space<vmem>>, vector<1x1x32xf32>
    %96 = vector.shape_cast %95 : vector<1x1x32xf32> to vector<1x32xf32>
    %97 = vector.broadcast %96 : vector<1x32xf32> to vector<16x32xf32>
    %98 = arith.addf %94, %97 : vector<16x32xf32>
    %99 = arith.mulf %46, %98 : vector<16x32xf32>
    %100 = arith.addf %91, %99 : vector<16x32xf32>
    %101 = math.tanh %100 : vector<16x32xf32>
    %cst_77 = arith.constant 1.000000e+00 : f32
    %102 = vector.broadcast %cst_77 : f32 to vector<16x32xf32>
    %103 = arith.subf %102, %75 : vector<16x32xf32>
    %104 = arith.mulf %103, %101 : vector<16x32xf32>
    %105 = arith.mulf %75, %16 : vector<16x32xf32>
    %106 = arith.addf %104, %105 : vector<16x32xf32>
    %c0_78 = arith.constant 0 : index
    %c0_79 = arith.constant 0 : index
    %107 = vector.load %arg12[%c0_78, %c0_79] : memref<16x32xf32, #tpu.memory_space<vmem>>, vector<16x32xf32>
    tpu.vector_store %arg12[%c0_78, %c0_79], %106 {strides = array<i32>} : memref<16x32xf32, #tpu.memory_space<vmem>>, vector<16x32xf32>,
    return
  }
  func.func @transform_0(%arg0: i32) -> (i32, i32) {
    %c0_i32 = arith.constant 0 : i32
    %c0_i32_0 = arith.constant 0 : i32
    return %arg0, %c0_i32 : i32, i32
  }
  func.func @transform_1(%arg0: i32) -> (i32, i32) {
    %c0_i32 = arith.constant 0 : i32
    %c0_i32_0 = arith.constant 0 : i32
    return %arg0, %c0_i32 : i32, i32
  }
  func.func @transform_2(%arg0: i32) -> (i32, i32) {
    %c0_i32 = arith.constant 0 : i32
    %c0_i32_0 = arith.constant 0 : i32
    %c0_i32_1 = arith.constant 0 : i32
    return %c0_i32, %c0_i32_0 : i32, i32
  }
  func.func @transform_3(%arg0: i32) -> (i32, i32) {
    %c0_i32 = arith.constant 0 : i32
    %c0_i32_0 = arith.constant 0 : i32
    return %arg0, %c0_i32 : i32, i32
  }
  func.func @transform_4(%arg0: i32) -> (i32, i32) {
    %c0_i32 = arith.constant 0 : i32
    %c0_i32_0 = arith.constant 0 : i32
    %c0_i32_1 = arith.constant 0 : i32
    return %c0_i32, %c0_i32_0 : i32, i32
  }
  func.func @transform_5(%arg0: i32) -> (i32, i32, i32) {
    %c0_i32 = arith.constant 0 : i32
    %c0_i32_0 = arith.constant 0 : i32
    %c0_i32_1 = arith.constant 0 : i32
    %c0_i32_2 = arith.constant 0 : i32
    return %c0_i32, %c0_i32_0, %c0_i32_1 : i32, i32, i32
  }
  func.func @transform_6(%arg0: i32) -> (i32, i32, i32) {
    %c0_i32 = arith.constant 0 : i32
    %c0_i32_0 = arith.constant 0 : i32
    %c0_i32_1 = arith.constant 0 : i32
    %c0_i32_2 = arith.constant 0 : i32
    return %c0_i32, %c0_i32_0, %c0_i32_1 : i32, i32, i32
  }
  func.func @transform_7(%arg0: i32) -> (i32, i32, i32) {
    %c0_i32 = arith.constant 0 : i32
    %c0_i32_0 = arith.constant 0 : i32
    %c0_i32_1 = arith.constant 0 : i32
    %c0_i32_2 = arith.constant 0 : i32
    return %c0_i32, %c0_i32_0, %c0_i32_1 : i32, i32, i32
  }
  func.func @transform_8(%arg0: i32) -> (i32, i32, i32) {
    %c0_i32 = arith.constant 0 : i32
    %c0_i32_0 = arith.constant 0 : i32
    %c0_i32_1 = arith.constant 0 : i32
    %c0_i32_2 = arith.constant 0 : i32
    return %c0_i32, %c0_i32_0, %c0_i32_1 : i32, i32, i32
  }
  func.func @transform_9(%arg0: i32) -> (i32, i32, i32) {
    %c0_i32 = arith.constant 0 : i32
    %c0_i32_0 = arith.constant 0 : i32
    %c0_i32_1 = arith.constant 0 : i32
    %c0_i32_2 = arith.constant 0 : i32
    return %c0_i32, %c0_i32_0, %c0_i32_1 : i32, i32, i32
  }
  func.func @transform_10(%arg0: i32) -> (i32, i32, i32) {
    %c0_i32 = arith.constant 0 : i32
    %c0_i32_0 = arith.constant 0 : i32
    %c0_i32_1 = arith.constant 0 : i32
    %c0_i32_2 = arith.constant 0 : i32
    return %c0_i32, %c0_i32_0, %c0_i32_1 : i32, i32, i32
  }
  func.func @transform_11(%arg0: i32) -> (i32, i32) {
    %c0_i32 = arith.constant 0 : i32
    %c0_i32_0 = arith.constant 0 : i32
    return %arg0, %c0_i32 : i32, i32
  }
}

</mosaic_0001>

<bundles_post_ra>
// kernel: rgn_forward.2
= control target key start
LH: loop header
LB: loop body
LE: loop exit
PB: predicated region body
PF: predicated region fallthrough
CT: control target
= control target key end

     0   :  { %v1020_v0 = vmov 0   ;;  %v1021_v2 = vmov 0.0   ;;  %vm60_vm0 = vcmask 1043456   ;;  %vm1022_vm1 = vmmov 0   ;;  %s1267_s0 = inlined_call_operand.vmem [shape: s32[16,1], index: 0, kind: input, shape index: {}]   ;;  %s1268_s2 = inlined_call_operand.vmem [shape: f32[8,4], index: 2, kind: input, shape index: {}]   ;;  %s1269_s5 = inlined_call_operand.vmem [shape: bf16[3,6,32], index: 5, kind: input, shape index: {}]   ;;  %s1270_s1 = inlined_call_operand.vmem [shape: f32[16,6], index: 1, kind: input, shape index: {}]   ;;  %s1271_s8 = inlined_call_operand.vmem [shape: bf16[3,32,32], index: 8, kind: input, shape index: {}]   ;;  %s1272_s6 = inlined_call_operand.vmem [shape: bf16[3,4,32], index: 6, kind: input, shape index: {}]   ;;  %s1273_s3 = inlined_call_operand.vmem [shape: f32[16,32], index: 3, kind: input, shape index: {}, may-alias: {3,11}]   ;;  %s1274_s7 = inlined_call_operand.vmem [shape: bf16[3,8,32], index: 7, kind: input, shape index: {}]   ;;  %s1275_s4 = inlined_call_operand.vmem [shape: f32[1,8], index: 4, kind: input, shape index: {}]   ;;  %s1276_s10 = inlined_call_operand.vmem [shape: f32[3,1,32], index: 10, kind: input, shape index: {}]   ;;  %s1277_s9 = inlined_call_operand.vmem [shape: f32[3,1,32], index: 9, kind: input, shape index: {}]   ;;  %s1278_s11 = inlined_call_operand.vmem [shape: f32[16,32], index: 11, kind: output, shape index: {}, may-alias: {3,11}]  }
   0x1   :  { %993 = vset.pattern.permute.xlu0 %v1020_v0  ;;  %v39_v1 = vld [vmem:[%s1267_s0] sm:$0xff]  ;;  %906 = vmatprep.subr.bf16.mxu0 %v1021_v2  ;;  %v40_v5 = vld [vmem:[%s1267_s0 + $0x8] sm:$0xff]  ;;  %v41_v7 = vlaneseq  ;;  %vm169_vm3 = vcmask 1042432   ;;  %vm56_vm5 = vcmask 64512   ;;  %vm165_vm6 = vcmask 48128   ;;  %v996_v30 = vld [vmem:[%s1271_s8 + $0x18] sm:$0xff]  }
   0x2   :  { %v54_v3 = vld [vmem:[%s1268_s2] sm:$0xff]  ;;  %44 = vperm.xlu0 %993, %v39_v1   ;;  %912 = vmatprep.subr.bf16.mxu1 %v1021_v2  ;;  %v106_v17 = vld [vmem:[%s1270_s1 + $0x8] sm:$0xff]  ;;  %vm120_vm7 = vcmask 1041408   ;;  %vm299_vm8 = vcmask 261120   ;;  %v997_v31 = vld [vmem:[%s1271_s8 + $0x10] sm:$0xff]   ;;  %vm116_vm9 = vcmask 31744  }
   0x3   :  { %v55_v4 = vpack.c.bf16 %v54_v3, %v54_v3  ;;  %908 = vmatprep.mubr.msk.bf16.mxu0 %vm1022_vm1, %v1021_v2  ;;  %914 = vmatprep.mubr.msk.bf16.mxu1 %vm1022_vm1, %v1021_v2  ;;  %v42_v8 = vand.u32 127, %v41_v7  ;;  %v114_v11 = vld [vmem:[%s1269_s5] sm:$0x7]  ;;  %v994_v19 = vld [vmem:[%s1271_s8 + $0x8] sm:$0xff]   ;;  %v841_v26 = vld [vmem:[%s1269_s5 + $0x4] sm:$0x7] }
   0x4   :  { %v171_v15 = vsel %vm169_vm3, %v114_v11, 0  ;;  %v105_v16 = vld [vmem:[%s1270_s1] sm:$0xff]  ;;  %v1140_v24 = vld [vmem:[%s1273_s3 + $0x8] sm:$0xff]  ;;  %v407_v27 = vsel %vm169_vm3, %v841_v26, 0 }
   0x5   :  { %v62_v6 = vsel %vm60_vm0, %v55_v4, 0  ;;  %v107_v18 = vpack.c.bf16 %v106_v17, %v105_v16  ;;  %v115_v20 = vld [vmem:[%s1272_s6] sm:$0x3]  ;;  %v842_v28 = vld [vmem:[%s1272_s6 + $0x2] sm:$0x3]  ;;  %v998_v36 = vld [vmem:[%s1271_s8 + $0x28] sm:$0xff]  }
   0x6   :  { %907 = vmatpush3.bf16.msra.mxu0 %v62_v6  ;;  %47 = vperm.xlu0 %993, %v40_v5   ;;  %v122_v21 = vsel %vm120_vm7, %v115_v20, 0  ;;  %v995_v22 = vld [vmem:[%s1271_s8] sm:$0xff]   ;;  %v363_v29 = vsel %vm120_vm7, %v842_v28, 0  ;;  %v860_v32 = vld [vmem:[%s1269_s5 + $0x8] sm:$0x7] }
   0x7   :  { %918 = vmatprep.subr.bf16.mxu0 %v1021_v2  ;;  %913 = vmatpush3.bf16.msra.mxu1 %v122_v21  ;;  %v1135_v23 = vld [vmem:[%s1273_s3] sm:$0xff]  ;;  %v640_v33 = vsel %vm169_vm3, %v860_v32, 0  ;;  %v864_v49 = vld [vmem:[%s1274_s7 + $0x8] sm:$0xf] }
   0x8   :  { %924 = vmatprep.subr.bf16.mxu1 %v1021_v2  ;;  %v113_v25 = vpack.c.bf16 %v1140_v24, %v1135_v23  ;;  %v861_v34 = vld [vmem:[%s1272_s6 + $0x4] sm:$0x3]  ;;  %v214_v40 = vld [vmem:[%s1274_s7] sm:$0xf]  ;;  %v686_v50 = vsel %vm60_vm0, %v864_v49, 0 }
   0x9   :  { %v596_v35 = vsel %vm120_vm7, %v861_v34, 0  ;;  %v999_v37 = vld [vmem:[%s1271_s8 + $0x20] sm:$0xff]   ;;  %v219_v43 = vsel %vm60_vm0, %v214_v40, 0 }
   0xa   :  { %v109_v45 = vld [vmem:[%s1275_s4] sm:$0x1]  ;;  %v845_v47 = vld [vmem:[%s1274_s7 + $0x4] sm:$0xf] }
   0xb   :  { %v110_v46 = vpack.c.bf16 %v109_v45, %v109_v45  ;;  %v453_v48 = vsel %vm60_vm0, %v845_v47, 0  ;;  %v848_v47 = vld [vmem:[%s1277_s9 + $0x1] ss:$0 sm:$0xff] }
  0x7d   :  { %v45_v9 = vpop.permute.xlu0 %44 }
  0x7e   :  { %vm49_vm2 = vcmp.eq.s32.totalorder %v42_v8, %v45_v9 }
  0x7f   :  { %v51_v12 = vsel %vm49_vm2, 1.0, %v1021_v2 }
  0x81   :  { %v48_v10 = vpop.permute.xlu0 %47 }
  0x82   :  { %vm50_vm4 = vcmp.eq.s32.totalorder %v42_v8, %v48_v10 }
  0x83   :  { %v52_v13 = vsel %vm50_vm4, 1.0, %v1021_v2 }
  0x84   :  { %v53_v14 = vpack.c.bf16 %v52_v13, %v51_v12  ;;  %v262_v13 = vshrl.u32 %v41_v7, 7 }
  0x86   :  { %909 = vmatmul.mubr.msk.bf16.vlgmr.msra.gmra.mxu0 %vm56_vm5, %v53_v14  ;;  %v263_v16 = vsub.s32 0, %v262_v13 }
  0x87   :  { %919 = vmatpush3.bf16.msra.mxu0 %v171_v15  ;;  %920 = vmatprep.mubr.msk.bf16.mxu0 %vm1022_vm1, %v1021_v2 }
  0x88   :  { %930 = vmatprep.subr.bf16.mxu0 %v1021_v2 }
  0x8e   :  { %921 = vmatmul.mubr.msk.bf16.vlgmr.msra.gmra.mxu0 %vm165_vm6, %v107_v18 }
  0x8f   :  { %931 = vmatpush3.bf16.msra.mxu0 %v994_v19  ;;  %934 = vmatprep.mubr.msk.bf16.mxu0 %vm1022_vm1, %v1021_v2 }
  0x90   :  { %932 = vmatprep.subr.bf16.mxu0 %v1021_v2 }
  0x93   :  { %933 = vmatpush3.bf16.msra.mxu0 %v995_v22  ;;  %v835_v22 = vld [vmem:[%s1276_s10] ss:$0 sm:$0xff] }
  0x94   :  { %944 = vmatprep.subr.bf16.mxu0 %v1021_v2 }
  0x96   :  { %935 = vmatmul.mubr.msk.bf16.vlgmr.msra.gmra.mxu0 %vm299_vm8, %v113_v25 }
  0x97   :  { %946 = vmatprep.mubr.msk.bf16.mxu0 %vm1022_vm1, %v1021_v2  ;;  %945 = vmatpush3.bf16.msra.mxu0 %v407_v27 }
  0x98   :  { %956 = vmatprep.subr.bf16.mxu0 %v1021_v2 }
  0x9e   :  { %947 = vmatmul.mubr.msk.bf16.vlgmr.msra.gmra.mxu0 %vm165_vm6, %v107_v18 }
  0x9f   :  { %957 = vmatpush3.bf16.msra.mxu0 %v996_v30  ;;  %960 = vmatprep.mubr.msk.bf16.mxu0 %vm1022_vm1, %v1021_v2 }
  0xa0   :  { %958 = vmatprep.subr.bf16.mxu0 %v1021_v2 }
  0xa3   :  { %959 = vmatpush3.bf16.msra.mxu0 %v997_v31 }
  0xa4   :  { %970 = vmatprep.subr.bf16.mxu0 %v1021_v2 }
  0xa6   :  { %961 = vmatmul.mubr.msk.bf16.vlgmr.msra.gmra.mxu0 %vm299_vm8, %v113_v25 }
  0xa7   :  { %972 = vmatprep.mubr.msk.bf16.mxu0 %vm1022_vm1, %v1021_v2  ;;  %971 = vmatpush3.bf16.msra.mxu0 %v640_v33 }
  0xa8   :  { %982 = vmatprep.subr.bf16.mxu0 %v1021_v2 }
  0xae   :  { %973 = vmatmul.mubr.msk.bf16.vlgmr.msra.gmra.mxu0 %vm165_vm6, %v107_v18 }
  0xaf   :  { %983 = vmatpush3.bf16.msra.mxu0 %v998_v36  ;;  %986 = vmatprep.mubr.msk.bf16.mxu0 %vm1022_vm1, %v1021_v2 }
  0xb0   :  { %984 = vmatprep.subr.bf16.mxu0 %v1021_v2 }
  0xb3   :  { %985 = vmatpush3.bf16.msra.mxu0 %v999_v37 }
  0xb6   :  { %987 = vmatmul.mubr.msk.bf16.vlgmr.msra.gmra.mxu0 %vm299_vm8, %v113_v25  ;;  %v834_v25 = vld [vmem:[%s1277_s9] ss:$0 sm:$0xff] }
 0x146   :  { %v98_v38 = vpop.f32.mrf.mxu0 }
 0x148   :  { %v910_v39 = vpop.f32.mrf.mxu0 }
 0x14a   :  { %v101_v41 = vpop.f32.mrf.mxu0 }
 0x14b   :  { %v108_v42 = vpack.c.bf16 %v101_v41, %v98_v38 }
 0x14c   :  { %v911_v44 = vpop.f32.mrf.mxu0 }
 0x14d   :  { %915 = vmatmul.mubr.msk.bf16.vlgmr.msra.gmra.mxu1 %vm116_vm9, %v108_v42 }
 0x14e   :  { %925 = vmatpush3.bf16.msra.mxu1 %v219_v43  ;;  %926 = vmatprep.mubr.msk.bf16.mxu1 %vm1022_vm1, %v1021_v2  ;;  %v207_v51 = vpop.f32.mrf.mxu0 }
 0x14f   :  { %938 = vmatprep.subr.bf16.mxu1 %v1021_v2 }
 0x150   :  { %v922_v52 = vpop.f32.mrf.mxu0 }
 0x152   :  { %v210_v53 = vpop.f32.mrf.mxu0 }
 0x154   :  { %v923_v54 = vpop.f32.mrf.mxu0 }
 0x155   :  { %927 = vmatmul.mubr.msk.bf16.vlgmr.msra.gmra.mxu1 %vm56_vm5, %v110_v46 }
 0x156   :  { %939 = vmatpush3.bf16.msra.mxu1 %v363_v29  ;;  %940 = vmatprep.mubr.msk.bf16.mxu1 %vm1022_vm1, %v1021_v2  ;;  %v337_v55 = vpop.f32.mrf.mxu0 }
 0x157   :  { %950 = vmatprep.subr.bf16.mxu1 %v1021_v2  ;;  %v338_v29 = vadd.f32 %v835_v22, %v337_v55 }
 0x158   :  { %v936_v56 = vpop.f32.mrf.mxu0 }
 0x15a   :  { %v340_v57 = vpop.f32.mrf.mxu0 }
 0x15b   :  { %v341_v30 = vadd.f32 %v835_v22, %v340_v57 }
 0x15c   :  { %v937_v58 = vpop.f32.mrf.mxu0 }
 0x15d   :  { %941 = vmatmul.mubr.msk.bf16.vlgmr.msra.gmra.mxu1 %vm116_vm9, %v108_v42 }
 0x15e   :  { %951 = vmatpush3.bf16.msra.mxu1 %v453_v48  ;;  %952 = vmatprep.mubr.msk.bf16.mxu1 %vm1022_vm1, %v1021_v2  ;;  %v443_v59 = vpop.f32.mrf.mxu0 }
 0x15f   :  { %964 = vmatprep.subr.bf16.mxu1 %v1021_v2 }
 0x160   :  { %v948_v60 = vpop.f32.mrf.mxu0 }
 0x162   :  { %v446_v61 = vpop.f32.mrf.mxu0 }
 0x164   :  { %v949_v62 = vpop.f32.mrf.mxu0 }
 0x165   :  { %953 = vmatmul.mubr.msk.bf16.vlgmr.msra.gmra.mxu1 %vm56_vm5, %v110_v46 }
 0x166   :  { %965 = vmatpush3.bf16.msra.mxu1 %v596_v35  ;;  %966 = vmatprep.mubr.msk.bf16.mxu1 %vm1022_vm1, %v1021_v2  ;;  %v570_v63 = vpop.f32.mrf.mxu0 }
 0x167   :  { %976 = vmatprep.subr.bf16.mxu1 %v1021_v2 }
 0x168   :  { %v962_v0 = vpop.f32.mrf.mxu0 }
 0x16a   :  { %v573_v1 = vpop.f32.mrf.mxu0 }
 0x16c   :  { %v963_v3 = vpop.f32.mrf.mxu0 }
 0x16d   :  { %967 = vmatmul.mubr.msk.bf16.vlgmr.msra.gmra.mxu1 %vm116_vm9, %v108_v42 }
 0x16e   :  { %977 = vmatpush3.bf16.msra.mxu1 %v686_v50  ;;  %978 = vmatprep.mubr.msk.bf16.mxu1 %vm1022_vm1, %v1021_v2  ;;  %v1226_v4 = vpop.f32.mrf.mxu0 }
 0x170   :  { %v974_v2 = vpop.f32.mrf.mxu0 }
 0x172   :  { %v1228_v5 = vpop.f32.mrf.mxu0 }
 0x174   :  { %v975_v6 = vpop.f32.mrf.mxu0 }
 0x175   :  { %979 = vmatmul.mubr.msk.bf16.vlgmr.msra.gmra.mxu1 %vm56_vm5, %v110_v46  ;;  %v854_v46 = vld [vmem:[%s1276_s10 + $0x1] ss:$0 sm:$0xff] }
 0x176   :  { %v1230_v8 = vpop.f32.mrf.mxu0  ;;  %v571_v52 = vadd.f32 %v854_v46, %v570_v63 }
 0x178   :  { %v988_v9 = vpop.f32.mrf.mxu0 }
 0x17a   :  { %v1232_v10 = vpop.f32.mrf.mxu0 }
 0x17c   :  { %v989_v11 = vpop.f32.mrf.mxu0 }
 0x20d   :  { %v158_v12 = vpop.f32.mrf.mxu1 }
 0x20e   :  { %v208_v19 = vadd.f32 %v207_v51, %v158_v12 }
 0x20f   :  { %v916_v14 = vpop.f32.mrf.mxu1 }
 0x211   :  { %v161_v15 = vpop.f32.mrf.mxu1 }
 0x212   :  { %v211_v20 = vadd.f32 %v210_v53, %v161_v15  ;;  %v574_v53 = vadd.f32 %v854_v46, %v573_v1  ;;  %v873_v15 = vld [vmem:[%s1276_s10 + $0x2] ss:$0 sm:$0xff] }
 0x213   :  { %v917_v17 = vpop.f32.mrf.mxu1  ;;  %v804_v22 = vadd.f32 %v873_v15, %v1230_v8 }
 0x215   :  { %v255_v18 = vpop.f32.mrf.mxu1 }
 0x216   :  { %v264_v21 = vrot.slane %v255_v18, %v263_v16 }
 0x217   :  { %v928_v26 = vpop.f32.mrf.mxu1 }
 0x218   :  { %v265_v27 = vadd.f32 %v264_v21, %v208_v19  ;;  %v266_v28 = vadd.f32 %v264_v21, %v211_v20  ;;  %v867_v20 = vld [vmem:[%s1277_s9 + $0x2] ss:$0 sm:$0xff] }
 0x219   :  { %v258_v7 = vpop.f32.mrf.mxu1 }
 0x21a   :  { %v274_v31 = vadd.f32 %v834_v25, %v265_v27  ;;  %v275_v32 = vadd.f32 %v834_v25, %v266_v28  ;;  %v807_v25 = vadd.f32 %v873_v15, %v1232_v10 }
 0x21b   :  { %v929_v33 = vpop.f32.mrf.mxu1 }
 0x21c   :  { %v344_v34 = vadd.f32 %v338_v29, %v274_v31  ;;  %v345_v35 = vadd.f32 %v341_v30, %v275_v32 }
 0x21d   :  { %v399_v36 = vpop.f32.mrf.mxu1 }
 0x21e   :  { %v839_v37 = vmul.f32 -1.442695, %v344_v34  ;;  %v840_v38 = vmul.f32 -1.442695, %v345_v35  ;;  %v444_v43 = vadd.f32 %v443_v59, %v399_v36 }
 0x21f   :  { %v942_v39 = vpop.f32.mrf.mxu1 }
 0x220   :  { %1000 = vpow2.f32 %v839_v37 }
 0x221   :  { %1002 = vpow2.f32 %v840_v38  ;;  %v402_v40 = vpop.f32.mrf.mxu1 }
 0x222   :  { %v447_v44 = vadd.f32 %v446_v61, %v402_v40 }
 0x223   :  { %v943_v41 = vpop.f32.mrf.mxu1 }
 0x225   :  { %v489_v42 = vpop.f32.mrf.mxu1 }
 0x226   :  { %v498_v45 = vrot.slane %v489_v42, %v263_v16 }
 0x227   :  { %v954_v48 = vpop.f32.mrf.mxu1 }
 0x228   :  { %v499_v49 = vadd.f32 %v498_v45, %v444_v43  ;;  %v500_v50 = vadd.f32 %v498_v45, %v447_v44 }
 0x229   :  { %v492_v51 = vpop.f32.mrf.mxu1 }
 0x22a   :  { %v509_v54 = vadd.f32 %v848_v47, %v499_v49  ;;  %v510_v55 = vadd.f32 %v848_v47, %v500_v50 }
 0x22b   :  { %v955_v56 = vpop.f32.mrf.mxu1 }
 0x22c   :  { %v577_v57 = vadd.f32 %v571_v52, %v509_v54  ;;  %v578_v58 = vadd.f32 %v574_v53, %v510_v55 }
 0x22d   :  { %v1001_v59 = vpop.eup %1000  ;;  %v632_v60 = vpop.f32.mrf.mxu1 }
 0x22e   :  { %v1003_v61 = vpop.eup %1002  ;;  %v352_v62 = vadd.f32 1.0, %v1001_v59  ;;  %v858_v0 = vmul.f32 -1.442695, %v577_v57  ;;  %v859_v2 = vmul.f32 -1.442695, %v578_v58  ;;  %v677_v13 = vadd.f32 %v1226_v4, %v632_v60 }
 0x22f   :  { %v353_v3 = vadd.f32 1.0, %v1003_v61  ;;  %v968_v6 = vpop.f32.mrf.mxu1 }
 0x230   :  { %1004 = vrcp.f32 %v352_v62 }
 0x231   :  { %1006 = vrcp.f32 %v353_v3  ;;  %v635_v9 = vpop.f32.mrf.mxu1 }
 0x232   :  { %1008 = vpow2.f32 %v858_v0  ;;  %v680_v14 = vadd.f32 %v1228_v5, %v635_v9 }
 0x233   :  { %1010 = vpow2.f32 %v859_v2  ;;  %v969_v63 = vpop.f32.mrf.mxu1 }
 0x235   :  { %v722_v1 = vpop.f32.mrf.mxu1 }
 0x236   :  { %v731_v11 = vrot.slane %v722_v1, %v263_v16 }
 0x237   :  { %v980_v12 = vpop.f32.mrf.mxu1 }
 0x238   :  { %v732_v18 = vadd.f32 %v731_v11, %v677_v13  ;;  %v733_v19 = vadd.f32 %v731_v11, %v680_v14 }
 0x239   :  { %v725_v17 = vpop.f32.mrf.mxu1 }
 0x23a   :  { %v742_v5 = vadd.f32 %v867_v20, %v732_v18  ;;  %v743_v28 = vadd.f32 %v867_v20, %v733_v19 }
 0x23b   :  { %v981_v21 = vpop.f32.mrf.mxu1 }
 0x23d   :  { %v1005_v16 = vpop.eup %1004 }
 0x23e   :  { %v1007_v4 = vpop.eup %1006  ;;  %v810_v26 = vmul.f32 %v1005_v16, %v804_v22 }
 0x23f   :  { %v1009_v27 = vpop.eup %1008  ;;  %v811_v7 = vmul.f32 %v1007_v4, %v807_v25 }
 0x240   :  { %v1011_v29 = vpop.eup %1010  ;;  %v585_v30 = vadd.f32 1.0, %v1009_v27  ;;  %v812_v31 = vadd.f32 %v810_v26, %v742_v5 }
 0x241   :  { %v586_v32 = vadd.f32 1.0, %v1011_v29  ;;  %v813_v33 = vadd.f32 %v811_v7, %v743_v28 }
 0x242   :  { %1012 = vrcp.f32 %v585_v30 }
 0x243   :  { %1014 = vrcp.f32 %v586_v32 }
 0x244   :  { %1016 = vtanh.f32 %v812_v31 }
 0x245   :  { %1018 = vtanh.f32 %v813_v33 }
 0x24f   :  { %v1013_v34 = vpop.eup %1012 }
 0x250   :  { %v1015_v8 = vpop.eup %1014  ;;  %v816_v35 = vsub.f32 1.0, %v1013_v34  ;;  %v820_v39 = vmul.f32 %v1013_v34, %v1135_v23 }
 0x251   :  { %v1017_v36 = vpop.eup %1016  ;;  %v817_v10 = vsub.f32 1.0, %v1015_v8  ;;  %v821_v41 = vmul.f32 %v1015_v8, %v1140_v24 }
 0x252   :  { %v1019_v37 = vpop.eup %1018  ;;  %v818_v38 = vmul.f32 %v1017_v36, %v816_v35 }
 0x253   :  { %v819_v40 = vmul.f32 %v1019_v37, %v817_v10 }
 0x254   :  { %v822_v42 = vadd.f32 %v820_v39, %v818_v38 }
 0x255   :  { %v823_v43 = vadd.f32 %v821_v41, %v819_v40 }
 0x256   :  { %824 = vst.msk [vmem:[%s1278_s11] sm:$0xff] %vm299_vm8, %v822_v42 }
 0x257   :  { %825 = vst.msk [vmem:[%s1278_s11 + $0x8] sm:$0xff] %vm299_vm8, %v823_v43 }

// kernel: rgn_forward.3
= control target key start
LH: loop header
LB: loop body
LE: loop exit
PB: predicated region body
PF: predicated region fallthrough
CT: control target
= control target key end

     0   :  { %s1640_s0 = inlined_call_operand.vmem [shape: s32[1,16], index: 0, kind: input, shape index: {}]   ;;  %s1641_s1 = inlined_call_operand.vmem [shape: f32[16,32], index: 1, kind: input, shape index: {}]   ;;  %s1642_s2 = inlined_call_operand.vmem [shape: f32[8,4], index: 2, kind: input, shape index: {}]   ;;  %s1643_s3 = inlined_call_operand.vmem [shape: f32[8,32], index: 3, kind: input, shape index: {}, may-alias: {3,15}]   ;;  %s1644_s4 = inlined_call_operand.vmem [shape: f32[1,8], index: 4, kind: input, shape index: {}]   ;;  %s1645_s5 = inlined_call_operand.vmem [shape: bf16[3,32,32], index: 5, kind: input, shape index: {}]   ;;  %s1646_s6 = inlined_call_operand.vmem [shape: bf16[3,4,32], index: 6, kind: input, shape index: {}]   ;;  %s1647_s7 = inlined_call_operand.vmem [shape: bf16[3,8,32], index: 7, kind: input, shape index: {}]   ;;  %s1648_s8 = inlined_call_operand.vmem [shape: bf16[3,32,32], index: 8, kind: input, shape index: {}]   ;;  %s1649_s9 = inlined_call_operand.vmem [shape: f32[3,1,32], index: 9, kind: input, shape index: {}]   ;;  %s1650_s10 = inlined_call_operand.vmem [shape: f32[3,1,32], index: 10, kind: input, shape index: {}]   ;;  %s1651_s11 = inlined_call_operand.vmem [shape: bf16[32,8], index: 11, kind: input, shape index: {}]   ;;  %s1652_s12 = inlined_call_operand.vmem [shape: bf16[32,8], index: 12, kind: input, shape index: {}]   ;;  %s1653_s13 = inlined_call_operand.vmem [shape: bf16[8,8], index: 13, kind: input, shape index: {}]   ;;  %s1654_s14 = inlined_call_operand.vmem [shape: f32[1,8], index: 14, kind: input, shape index: {}]   ;;  %s1655_s15 = inlined_call_operand.vmem [shape: f32[8,32], index: 15, kind: output, shape index: {0}, may-alias: {3,15}]   ;;  %s1656_s16 = inlined_call_operand.hbm [shape: f32[1,8], index: 16, kind: output, shape index: {1}]  }
   0x1   :  { %1657 = sst [smem:[#allocation6_spill]] %s1640_s0 }
   0x2   :  { %v60_v0 = vld [vmem:[%s1641_s1] sm:$0xff]  ;;  %v61_v1 = vld [vmem:[%s1641_s1 + $0x8] sm:$0xff]  ;;  %vm192_vm0 = vcmask 261120   ;;  %v65_v2 = vlaneseq  ;;  %v1324_v4 = vmov 0.0   ;;  %vm1325_vm1 = vmmov 0   ;;  %s1658_s28 = sld [smem:[#allocation6_spill]] }
   0x3   :  { %v120_v3 = vld [vmem:[%s1642_s2] sm:$0xff]  ;;  %1161 = vmatprep.subr.bf16.mxu0 %v1324_v4  ;;  %v62_v5 = vpack.c.bf16 %v61_v1, %v60_v0  ;;  %v856_v6 = vsel %vm192_vm0, %v60_v0, 0.0  ;;  %v857_v7 = vsel %vm192_vm0, %v61_v1, 0.0  ;;  %1163 = vmatprep.mubr.msk.bf16.mxu0 %vm1325_vm1, %v1324_v4  ;;  %vm136_vm2 = vcmask 1041408   ;;  %v1276_v16 = vld [vmem:[%s1645_s5 + $0x8] sm:$0xff]  }
   0x4   :  { %v1429_v9 = vadd.f32 %v857_v7, %v856_v6  ;;  %v1431_v10 = vshrl.u32 %v65_v2, 7  ;;  %1167 = vmatprep.subr.bf16.mxu1 %v1324_v4  ;;  %v131_v11 = vld [vmem:[%s1646_s6] sm:$0x3]  ;;  %1169 = vmatprep.mubr.msk.bf16.mxu1 %vm1325_vm1, %v1324_v4  ;;  %v121_v13 = vpack.c.bf16 %v120_v3, %v120_v3  ;;  %vm132_vm4 = vcmask 31744  }
   0x5   :  { %1162 = vmatpush3.bf16.msra.mxu0 %v62_v5  ;;  %v138_v12 = vsel %vm136_vm2, %v131_v11, 0  ;;  %v236_v14 = vld [vmem:[%s1647_s7] sm:$0xf]  ;;  %vm241_vm5 = vcmask 1043456   ;;  %vm76_vm6 = vcmask 130048  }
   0x6   :  { %1168 = vmatpush3.bf16.msra.mxu1 %v138_v12  ;;  %1173 = vmatprep.subr.bf16.mxu0 %v1324_v4  ;;  %v243_v17 = vsel %vm241_vm5, %v236_v14, 0  ;;  %v1277_v19 = vld [vmem:[%s1645_s5] sm:$0xff]  }
   0x7   :  { %1181 = vmatprep.subr.bf16.mxu1 %v1324_v4 }
   0x8   :  { %v1056_v8 = vld [vmem:[%s1658_s28] ss:$0 sm:$0xff] }
   0x9   :  { %vm73_vm3 = vcmp.eq.s32.totalorder %v1431_v10, %v1056_v8  ;;  %1170 = vmatmul.mubr.msk.bf16.vlgmr.msra.gmra.mxu1 %vm132_vm4, %v121_v13 }
   0xa   :  { %v74_v15 = vsel %vm73_vm3, 1.0, %v1324_v4  ;;  %1182 = vmatpush3.bf16.msra.mxu1 %v243_v17  ;;  %1183 = vmatprep.mubr.msk.bf16.mxu1 %vm1325_vm1, %v1324_v4 }
   0xb   :  { %v75_v18 = vpack.c.bf16 %v74_v15, %v74_v15  ;;  %1195 = vmatprep.subr.bf16.mxu1 %v1324_v4 }
   0xd   :  { %1164 = vmatmul.mubr.msk.bf16.vlgmr.msra.gmra.mxu0 %vm76_vm6, %v75_v18 }
   0xe   :  { %1174 = vmatpush3.bf16.msra.mxu0 %v1276_v16  ;;  %1177 = vmatprep.mubr.msk.bf16.mxu0 %vm1325_vm1, %v1324_v4 }
   0xf   :  { %1175 = vmatprep.subr.bf16.mxu0 %v1324_v4 }
  0x12   :  { %1176 = vmatpush3.bf16.msra.mxu0 %v1277_v19 }
  0x13   :  { %1187 = vmatprep.subr.bf16.mxu0 %v1324_v4 }
  0x14   :  { %22 = vsyncpa [#allocation4], 0  ;;  %v122_v20 = vld [vmem:[%s1644_s4] sm:$0x1]  ;;  %vm237_vm7 = vcmask 64512   ;;  %v1278_v32 = vld [vmem:[%s1648_s8 + $0x8] sm:$0xff]  }
  0x15   :  { %v1465_v21 = vpack.c.bf16 %v122_v20, %v122_v20  ;;  %v1073_v22 = vld [vmem:[%s1646_s6 + $0x2] sm:$0x3]  ;;  %v1078_v24 = vld [vmem:[%s1647_s7 + $0x4] sm:$0xf]  ;;  %v1101_v28 = vld [vmem:[%s1647_s7 + $0x8] sm:$0xf] }
  0x16   :  { %v379_v23 = vsel %vm136_vm2, %v1073_v22, 0  ;;  %v476_v25 = vsel %vm241_vm5, %v1078_v24, 0  ;;  %v1096_v26 = vld [vmem:[%s1646_s6 + $0x4] sm:$0x3]  ;;  %v709_v29 = vsel %vm241_vm5, %v1101_v28, 0  ;;  %v1280_v43 = vld [vmem:[%s1645_s5 + $0x18] sm:$0xff]  }
  0x17   :  { %1184 = vmatmul.mubr.msk.bf16.vlgmr.msra.gmra.mxu1 %vm237_vm7, %v1465_v21  ;;  %v612_v27 = vsel %vm136_vm2, %v1096_v26, 0  ;;  %v1279_v38 = vld [vmem:[%s1648_s8] sm:$0xff]   ;;  %v1281_v44 = vld [vmem:[%s1645_s5 + $0x10] sm:$0xff]   ;;  %v1282_v45 = vld [vmem:[%s1648_s8 + $0x18] sm:$0xff]   ;;  %v859_v8 = vrot.slane %v1429_v9, 4  ;;  %vm58_vm8 = vcmask 253952  }
  0x18   :  { %1197 = vmatprep.mubr.msk.bf16.mxu1 %vm1325_vm1, %v1324_v4  ;;  %1196 = vmatpush3.bf16.msra.mxu1 %v379_v23  ;;  %v1519_v39 = vld [vmem:[%s1643_s3] sm:$0xff]  ;;  %v1283_v46 = vld [vmem:[%s1648_s8 + $0x10] sm:$0xff]   ;;  %v1284_v47 = vld [vmem:[%s1645_s5 + $0x28] sm:$0xff]   ;;  %59 = vst.msk [vmem:[#allocation2] sm:$0x1] %vm58_vm8, %v1324_v4  ;;  %v287_v22 = vsub.s32 0, %v1431_v10 }
  0x19   :  { %1209 = vmatprep.subr.bf16.mxu1 %v1324_v4  ;;  %v125_v42 = vpack.c.bf16 %v1519_v39, %v1519_v39  ;;  %v1285_v48 = vld [vmem:[%s1645_s5 + $0x20] sm:$0xff]   ;;  %v1286_v49 = vld [vmem:[%s1648_s8 + $0x28] sm:$0xff]   ;;  %v860_v11 = vadd.f32 %v859_v8, %v1429_v9  ;;  %s1326_s1 = smov [#allocation3]   ;;  %vm1036_vm9 = vcmask 57344  }
  0x1a   :  { %v1287_v50 = vld [vmem:[%s1648_s8 + $0x20] sm:$0xff]   ;;  %v1288_v16 = vld [vmem:[%s1652_s12 + $0x8] sm:$0xff]   ;;  %s1046_s28 = sshll.u32 %s1326_s1, 4  ;;  %s1047_s28 = int_to_ptr.vmem [resolvable:$true] %s1046_s28 }
  0x1b   :  { %v861_v12 = vrot.slane %v860_v11, 2  ;;  %v1289_v17 = vld [vmem:[%s1651_s11 + $0x8] sm:$0xff]   ;;  %v1290_v19 = vld [vmem:[%s1652_s12] sm:$0xff]   ;;  %s1302_s6 = scalar_lea.vmem %s1047_s28, 16  ;;  %s1306_s5 = scalar_lea.vmem %s1047_s28, 32 }
  0x1c   :  { %v1291_v9 = vld [vmem:[%s1651_s11] sm:$0xff]   ;;  %p1303_p0 = scmp.ne.s32.totalorder %s1047_s28, %s1302_s6  ;;  %p1307_p1 = scmp.lt.s32.totalorder %s1047_s28, %s1047_s28 }
  0x1d   :  { %v1104_v8 = vld [vmem:[%s1649_s9 + $0x2] ss:$0 sm:$0xff]  ;;  %p1308_p2 = scmp.lt.s32.totalorder %s1306_s5, %s1302_s6 }
  0x1f   :  { %1198 = vmatmul.mubr.msk.bf16.vlgmr.msra.gmra.mxu1 %vm132_vm4, %v121_v13  ;;  %p1309_p3 = por %p1308_p2, %p1307_p1 }
  0x20   :  { %1211 = vmatprep.mubr.msk.bf16.mxu1 %vm1325_vm1, %v1324_v4  ;;  %1210 = vmatpush3.bf16.msra.mxu1 %v476_v25 }
  0x21   :  { %1223 = vmatprep.subr.bf16.mxu1 %v1324_v4  ;;  %p1310_p4 = pnand %p1309_p3, %p1303_p0 }
  0x27   :  { %1212 = vmatmul.mubr.msk.bf16.vlgmr.msra.gmra.mxu1 %vm237_vm7, %v1465_v21 }
  0x28   :  { %1225 = vmatprep.mubr.msk.bf16.mxu1 %vm1325_vm1, %v1324_v4  ;;  %1224 = vmatpush3.bf16.msra.mxu1 %v612_v27 }
  0x29   :  { %1237 = vmatprep.subr.bf16.mxu1 %v1324_v4 }
  0x2f   :  { %1226 = vmatmul.mubr.msk.bf16.vlgmr.msra.gmra.mxu1 %vm132_vm4, %v121_v13  ;;  %v862_v13 = vadd.f32 %v861_v12, %v860_v11 }
  0x30   :  { %1239 = vmatprep.mubr.msk.bf16.mxu1 %vm1325_vm1, %v1324_v4  ;;  %1238 = vmatpush3.bf16.msra.mxu1 %v709_v29 }
  0x31   :  { %1251 = vmatprep.subr.bf16.mxu1 %v1324_v4  ;;  %v863_v14 = vrot.slane %v862_v13, 1 }
  0x33   :  { %v864_v15 = vadd.f32 %v863_v14, %v862_v13 }
  0x35   :  { %v865_v18 = vmul.f32 0.0625, %v864_v15 }
  0x37   :  { %1240 = vmatmul.mubr.msk.bf16.vlgmr.msra.gmra.mxu1 %vm237_vm7, %v1465_v21  ;;  %v866_v20 = vpack.c.bf16 %v865_v18, %v865_v18 }
  0x38   :  { %1255 = vmatprep.mubr.msk.bf16.mxu1 %vm1325_vm1, %v1324_v4  ;;  %1252 = vmatpush3.bf16.msra.mxu1 %v1288_v16 }
  0x39   :  { %1253 = vmatprep.subr.bf16.mxu1 %v1324_v4 }
  0x3c   :  { %1254 = vmatpush3.bf16.msra.mxu1 %v1290_v19 }
  0x3d   :  { %1267 = vmatprep.subr.bf16.mxu1 %v1324_v4 }
  0xc9   :  { %v1505_v30 = vpop.f32.mrf.mxu1 }
  0xcb   :  { %v1171_v34 = vpop.f32.mrf.mxu1 }
  0xcd   :  { %v114_v31 = vpop.f32.mrf.mxu0  ;;  %v177_v36 = vpop.f32.mrf.mxu1 }
  0xce   :  { %v126_v33 = vpack.c.bf16 %v114_v31, %v114_v31  ;;  %v1063_v31 = vld [vmem:[%s1649_s9] ss:$0 sm:$0xff] }
  0xcf   :  { %v1165_v35 = vpop.f32.mrf.mxu0  ;;  %v1172_v40 = vpop.f32.mrf.mxu1 }
  0xd0   :  { %1178 = vmatmul.mubr.msk.bf16.vlgmr.msra.gmra.mxu0 %vm192_vm0, %v126_v33 }
  0xd1   :  { %1188 = vmatpush3.bf16.msra.mxu0 %v1278_v32  ;;  %v117_v37 = vpop.f32.mrf.mxu0  ;;  %1191 = vmatprep.mubr.msk.bf16.mxu0 %vm1325_vm1, %v1324_v4  ;;  %v1064_v32 = vld [vmem:[%s1650_s10] ss:$0 sm:$0xff] }
  0xd2   :  { %1189 = vmatprep.subr.bf16.mxu0 %v1324_v4 }
  0xd3   :  { %v1166_v41 = vpop.f32.mrf.mxu0 }
  0xd5   :  { %1190 = vmatpush3.bf16.msra.mxu0 %v1279_v38 }
  0xd6   :  { %1201 = vmatprep.subr.bf16.mxu0 %v1324_v4 }
  0xd7   :  { %v279_v51 = vpop.f32.mrf.mxu1 }
  0xd8   :  { %1192 = vmatmul.mubr.msk.bf16.vlgmr.msra.gmra.mxu0 %vm192_vm0, %v125_v42  ;;  %v288_v24 = vrot.slane %v279_v51, %v287_v22 }
  0xd9   :  { %1202 = vmatpush3.bf16.msra.mxu0 %v1280_v43  ;;  %1205 = vmatprep.mubr.msk.bf16.mxu0 %vm1325_vm1, %v1324_v4  ;;  %v1185_v52 = vpop.f32.mrf.mxu1 }
  0xda   :  { %1203 = vmatprep.subr.bf16.mxu0 %v1324_v4 }
  0xdb   :  { %v282_v53 = vpop.f32.mrf.mxu1 }
  0xdd   :  { %1204 = vmatpush3.bf16.msra.mxu0 %v1281_v44  ;;  %v1186_v54 = vpop.f32.mrf.mxu1 }
  0xde   :  { %1215 = vmatprep.subr.bf16.mxu0 %v1324_v4 }
  0xdf   :  { %v415_v55 = vpop.f32.mrf.mxu1 }
  0xe0   :  { %1206 = vmatmul.mubr.msk.bf16.vlgmr.msra.gmra.mxu0 %vm192_vm0, %v126_v33 }
  0xe1   :  { %1216 = vmatpush3.bf16.msra.mxu0 %v1282_v45  ;;  %1219 = vmatprep.mubr.msk.bf16.mxu0 %vm1325_vm1, %v1324_v4  ;;  %v1199_v56 = vpop.f32.mrf.mxu1 }
  0xe2   :  { %1217 = vmatprep.subr.bf16.mxu0 %v1324_v4 }
  0xe3   :  { %v418_v57 = vpop.f32.mrf.mxu1 }
  0xe5   :  { %1218 = vmatpush3.bf16.msra.mxu0 %v1283_v46  ;;  %v1200_v58 = vpop.f32.mrf.mxu1 }
  0xe6   :  { %1229 = vmatprep.subr.bf16.mxu0 %v1324_v4 }
  0xe7   :  { %v512_v59 = vpop.f32.mrf.mxu1 }
  0xe8   :  { %1220 = vmatmul.mubr.msk.bf16.vlgmr.msra.gmra.mxu0 %vm192_vm0, %v125_v42  ;;  %v521_v41 = vrot.slane %v512_v59, %v287_v22 }
  0xe9   :  { %1230 = vmatpush3.bf16.msra.mxu0 %v1284_v47  ;;  %1233 = vmatprep.mubr.msk.bf16.mxu0 %vm1325_vm1, %v1324_v4  ;;  %v1213_v60 = vpop.f32.mrf.mxu1  ;;  %v1081_v47 = vld [vmem:[%s1649_s9 + $0x1] ss:$0 sm:$0xff] }
  0xea   :  { %1231 = vmatprep.subr.bf16.mxu0 %v1324_v4 }
  0xeb   :  { %v515_v61 = vpop.f32.mrf.mxu1 }
  0xed   :  { %1232 = vmatpush3.bf16.msra.mxu0 %v1285_v48  ;;  %v1214_v62 = vpop.f32.mrf.mxu1  ;;  %v1087_v48 = vld [vmem:[%s1650_s10 + $0x1] ss:$0 sm:$0xff] }
  0xee   :  { %1243 = vmatprep.subr.bf16.mxu0 %v1324_v4 }
  0xef   :  { %v1572_v63 = vpop.f32.mrf.mxu1 }
  0xf0   :  { %1234 = vmatmul.mubr.msk.bf16.vlgmr.msra.gmra.mxu0 %vm192_vm0, %v126_v33 }
  0xf1   :  { %1244 = vmatpush3.bf16.msra.mxu0 %v1286_v49  ;;  %1247 = vmatprep.mubr.msk.bf16.mxu0 %vm1325_vm1, %v1324_v4  ;;  %v1227_v0 = vpop.f32.mrf.mxu1 }
  0xf2   :  { %1245 = vmatprep.subr.bf16.mxu0 %v1324_v4 }
  0xf3   :  { %v651_v1 = vpop.f32.mrf.mxu1 }
  0xf5   :  { %1246 = vmatpush3.bf16.msra.mxu0 %v1287_v50  ;;  %v1228_v2 = vpop.f32.mrf.mxu1 }
  0xf6   :  { %1259 = vmatprep.subr.bf16.mxu0 %v1324_v4  ;;  %v1110_v2 = vld [vmem:[%s1650_s10 + $0x2] ss:$0 sm:$0xff] }
  0xf7   :  { %v1574_v3 = vpop.f32.mrf.mxu1 }
  0xf8   :  { %1248 = vmatmul.mubr.msk.bf16.vlgmr.msra.gmra.mxu0 %vm192_vm0, %v125_v42  ;;  %v754_v0 = vrot.slane %v1574_v3, %v287_v22 }
  0xf9   :  { %1263 = vmatprep.mubr.msk.bf16.mxu0 %vm1325_vm1, %v1324_v4  ;;  %v1241_v5 = vpop.f32.mrf.mxu1  ;;  %1260 = vmatpush3.bf16.msra.mxu0 %v1289_v17 }
  0xfa   :  { %1261 = vmatprep.subr.bf16.mxu0 %v1324_v4 }
  0xfb   :  { %v748_v6 = vpop.f32.mrf.mxu1 }
  0xfd   :  { %v1242_v7 = vpop.f32.mrf.mxu1  ;;  %1262 = vmatpush3.bf16.msra.mxu0 %v1291_v9 }
 0x100   :  { %1264 = vmatmul.mubr.msk.bf16.vlgmr.msra.gmra.mxu0 %vm192_vm0, %v866_v20 }
 0x190   :  { %v230_v23 = vpop.f32.mrf.mxu0 }
 0x191   :  { %v231_v25 = vadd.f32 %v230_v23, %v1505_v30 }
 0x192   :  { %v1179_v26 = vpop.f32.mrf.mxu0 }
 0x193   :  { %v289_v28 = vadd.f32 %v288_v24, %v231_v25 }
 0x194   :  { %v233_v27 = vpop.f32.mrf.mxu0 }
 0x195   :  { %v297_v34 = vadd.f32 %v1063_v31, %v289_v28  ;;  %v839_v31 = vld [vmem:[#allocation2] sm:$0x1] }
 0x196   :  { %v1180_v29 = vpop.f32.mrf.mxu0 }
 0x198   :  { %v358_v33 = vpop.f32.mrf.mxu0 }
 0x199   :  { %v359_v35 = vadd.f32 %v1064_v32, %v358_v33 }
 0x19a   :  { %v1193_v10 = vpop.f32.mrf.mxu0 }
 0x19b   :  { %v364_v36 = vadd.f32 %v359_v35, %v297_v34  ;;  %v988_v34 = vld [vmem:[%s1653_s13] sm:$0xf] }
 0x19c   :  { %v361_v37 = vpop.f32.mrf.mxu0 }
 0x19d   :  { %v1068_v38 = vmul.f32 -1.442695, %v364_v36  ;;  %v990_v36 = vsel %vm241_vm5, %v988_v34, 0 }
 0x19e   :  { %v1194_v30 = vpop.f32.mrf.mxu0 }
 0x19f   :  { %1292 = vpow2.f32 %v1068_v38 }
 0x1a0   :  { %v467_v40 = vpop.f32.mrf.mxu0 }
 0x1a1   :  { %v468_v42 = vadd.f32 %v467_v40, %v415_v55 }
 0x1a2   :  { %v1207_v43 = vpop.f32.mrf.mxu0 }
 0x1a3   :  { %v522_v45 = vadd.f32 %v521_v41, %v468_v42 }
 0x1a4   :  { %v470_v44 = vpop.f32.mrf.mxu0 }
 0x1a5   :  { %v531_v50 = vadd.f32 %v1081_v47, %v522_v45  ;;  %v1033_v47 = vld [vmem:[%s1654_s14] sm:$0x1] }
 0x1a6   :  { %v1208_v46 = vpop.f32.mrf.mxu0 }
 0x1a8   :  { %v591_v49 = vpop.f32.mrf.mxu0 }
 0x1a9   :  { %v592_v51 = vadd.f32 %v1087_v48, %v591_v49 }
 0x1aa   :  { %v1221_v52 = vpop.f32.mrf.mxu0 }
 0x1ab   :  { %v597_v53 = vadd.f32 %v592_v51, %v531_v50 }
 0x1ac   :  { %v1293_v54 = vpop.eup %1292  ;;  %v594_v56 = vpop.f32.mrf.mxu0 }
 0x1ad   :  { %v368_v55 = vadd.f32 1.0, %v1293_v54  ;;  %v1091_v57 = vmul.f32 -1.442695, %v597_v53 }
 0x1ae   :  { %v1222_v58 = vpop.f32.mrf.mxu0 }
 0x1af   :  { %1294 = vrcp.f32 %v368_v55 }
 0x1b0   :  { %1296 = vpow2.f32 %v1091_v57  ;;  %v700_v59 = vpop.f32.mrf.mxu0 }
 0x1b1   :  { %v701_v62 = vadd.f32 %v700_v59, %v1572_v63 }
 0x1b2   :  { %v1235_v60 = vpop.f32.mrf.mxu0 }
 0x1b3   :  { %v755_v6 = vadd.f32 %v754_v0, %v701_v62 }
 0x1b4   :  { %v703_v61 = vpop.f32.mrf.mxu0 }
 0x1b5   :  { %v764_v15 = vadd.f32 %v1104_v8, %v755_v6 }
 0x1b6   :  { %v1236_v1 = vpop.f32.mrf.mxu0 }
 0x1b8   :  { %v824_v5 = vpop.f32.mrf.mxu0 }
 0x1b9   :  { %v825_v7 = vadd.f32 %v1110_v2, %v824_v5 }
 0x1ba   :  { %v1249_v11 = vpop.f32.mrf.mxu0 }
 0x1bc   :  { %v1295_v12 = vpop.eup %1294  ;;  %v827_v13 = vpop.f32.mrf.mxu0 }
 0x1bd   :  { %v1297_v14 = vpop.eup %1296  ;;  %v830_v63 = vmul.f32 %v1295_v12, %v825_v7 }
 0x1be   :  { %v601_v16 = vadd.f32 1.0, %v1297_v14  ;;  %v1250_v3 = vpop.f32.mrf.mxu0 }
 0x1bf   :  { %v831_v17 = vadd.f32 %v830_v63, %v764_v15 }
 0x1c0   :  { %1298 = vrcp.f32 %v601_v16  ;;  %v982_v37 = vpop.f32.mrf.mxu0 }
 0x1c1   :  { %1300 = vtanh.f32 %v831_v17 }
 0x1c2   :  { %v1265_v38 = vpop.f32.mrf.mxu0 }
 0x1c4   :  { %v985_v30 = vpop.f32.mrf.mxu0 }
 0x1c6   :  { %v1266_v40 = vpop.f32.mrf.mxu0 }
 0x1cd   :  { %v1299_v18 = vpop.eup %1298 }
 0x1ce   :  { %v1301_v19 = vpop.eup %1300  ;;  %v833_v9 = vsub.f32 1.0, %v1299_v18  ;;  %v835_v20 = vmul.f32 %v1299_v18, %v1519_v39 }
 0x1d0   :  { %v834_v22 = vmul.f32 %v1301_v19, %v833_v9 }
 0x1d2   :  { %v836_v23 = vadd.f32 %v835_v20, %v834_v22 }
 0x1d4   :  { %837 = vst.msk [vmem:[%s1655_s15] sm:$0xff] %vm192_vm0, %v836_v23  ;;  %v843_v24 = vsel %vm192_vm0, %v836_v23, 0.0 }
 0x1d5   :  { %v844_v25 = vrot.slane %v843_v24, 4 }
 0x1d7   :  { %v845_v26 = vadd.f32 %v844_v25, %v843_v24 }
 0x1d9   :  { %v846_v27 = vrot.slane %v845_v26, 2 }
 0x1db   :  { %v847_v28 = vadd.f32 %v846_v27, %v845_v26 }
 0x1dd   :  { %v848_v29 = vrot.slane %v847_v28, 1 }
 0x1df   :  { %v849_v32 = vadd.f32 %v848_v29, %v847_v28 }
 0x1e1   :  { %v850_v33 = vadd.f32 %v849_v32, %v839_v31 }
 0x1e3   :  { %852 = vst.msk [vmem:[#allocation2] sm:$0x1] %vm58_vm8, %v850_v33 }
 0x1ea   :  { %v867_v39 = vld [vmem:[#allocation2] sm:$0x1] }
 0x1eb   :  { %v868_v35 = vmul.f32 0.125, %v867_v39 }
 0x1ed   :  { %v869_v10 = vpack.c.bf16 %v868_v35, %v868_v35 }
 0x1ef   :  { %1256 = vmatmul.mubr.msk.bf16.vlgmr.msra.gmra.mxu1 %vm192_vm0, %v869_v10 }
 0x1f0   :  { %1268 = vmatpush3.bf16.msra.mxu1 %v990_v36  ;;  %1269 = vmatprep.mubr.msk.bf16.mxu1 %vm1325_vm1, %v1324_v4 }
 0x1f7   :  { %1270 = vmatmul.mubr.msk.bf16.vlgmr.msra.gmra.mxu1 %vm237_vm7, %v1465_v21 }
 0x2af   :  { %v927_v41 = vpop.f32.mrf.mxu1 }
 0x2b0   :  { %v983_v45 = vadd.f32 %v982_v37, %v927_v41 }
 0x2b1   :  { %v1257_v42 = vpop.f32.mrf.mxu1 }
 0x2b3   :  { %v930_v43 = vpop.f32.mrf.mxu1 }
 0x2b5   :  { %v1258_v44 = vpop.f32.mrf.mxu1 }
 0x2b7   :  { %v1026_v46 = vpop.f32.mrf.mxu1 }
 0x2b8   :  { %v1032_v48 = vadd.f32 %v1026_v46, %v983_v45 }
 0x2b9   :  { %v1271_v49 = vpop.f32.mrf.mxu1 }
 0x2ba   :  { %v1034_v4 = vadd.f32 %v1033_v47, %v1032_v48 }
 0x2bb   :  { %v1029_v21 = vpop.f32.mrf.mxu1 }
 0x2bc   :  { %v1035_v50 = vmax.f32 %v1034_v4, 0.0 }
 0x2bd   :  { %v1272_v51 = vpop.f32.mrf.mxu1 }
 0x2be   :  { %1037 = vst.msk [vmem:[#allocation3] sm:$0x1] %vm1036_vm9, %v1035_v50 }
 0x2bf   :  { %1313 = shalt.err (!%p1310_p4)
}
 0x2c0   :  { %1049 = dma.vmem_to_hbm [thread:$0]  %s1047_s28, 16, %s1656_s16, [#allocation4]  }
 0x2c1   :  { %1322 = dma.done.wait [#allocation4], 16  }
 0x2c2   :  { %1323 = vsyncadd [#allocation4], 4294967280 }
 0x2c3   :  { %1055 = vsyncpa [#allocation4], 1 }

</bundles_post_ra>
